<compile_context>
chip_gen: v5e
topology: v5e:2x2
jax: 0.10.0
libtpu: 0.0.40
codegen_flags: <defaults>
</compile_context>

<pallas_src>
import numpy as np
import jax
import jax.numpy as jnp
from jax.experimental import pallas as pl
from jax.experimental.pallas import tpu as pltpu

# Stands in for np.unique(Labels_name).shape[0] in the original script.
NUM_CLASSES = 11


def _round_up(x, m):
    return ((x + m - 1) // m) * m


def _make_fused_kernel(G, B_blk, L2p, C2P, CK2P, NC):
    """Whole-network kernel for one batch block:
    conv1(stride2)+ReLU+MaxPool2 -> conv2(1x1)+ReLU+MaxPool2 -> fc1+ReLU ->
    fc2 -> log_softmax.  Exactly 4 MXU matmuls, pooling = 2 VPU maximums."""

    def kernel(patch_ref, w1_ref, b1_ref, w2_ref, b2_ref,
               wf1_ref, bf1_ref, wf2_ref, bf2_ref, out_ref):
        # ---- conv1 (stride 2) as ONE matmul over pre-gathered patches ----
        patch = patch_ref[0]                                         # (4G, CKP) bf16
        h1 = jnp.dot(patch, w1_ref[...], preferred_element_type=jnp.float32)
        h1 = jnp.maximum(h1 + b1_ref[...], 0.0)                      # (4G, C1P) f32

        # ---- MaxPool1d #1: partners sit in the two contiguous row-halves ----
        p1 = jnp.maximum(h1[: 2 * G], h1[2 * G:])                    # (2G, C1P) f32

        # ---- conv2 (1x1) as ONE matmul ----
        h2 = jnp.dot(p1.astype(jnp.bfloat16), w2_ref[...],
                     preferred_element_type=jnp.float32)
        h2 = jnp.maximum(h2 + b2_ref[...], 0.0)                      # (2G, C2P) f32

        # ---- MaxPool1d #2: again a max of the two row-halves ----
        p2 = jnp.maximum(h2[:G], h2[G:])                             # (G, C2P) f32
        # rows 0 .. L2p*B_blk-1 are real (row = t*B_blk + b); the rest is
        # group padding that is never read below.

        # ---- flatten: lane-concatenate pooled steps; the channel-major
        #      PyTorch flatten is folded into the fc1 weight slab ----
        parts = [p2[t * B_blk:(t + 1) * B_blk, :] for t in range(L2p)]
        pad = CK2P - L2p * C2P
        if pad:
            parts.append(jnp.zeros((B_blk, pad), jnp.float32))
        xf = jnp.concatenate(parts, axis=1)                          # (B_blk, CK2P)

        # TODO(synk): dropout1/dropout2 (p=0.2) are identity (eval/inference).
        # ---- fc1 + ReLU as ONE matmul ----
        h3 = jnp.dot(xf.astype(jnp.bfloat16), wf1_ref[...],
                     preferred_element_type=jnp.float32)
        h3 = jnp.maximum(h3 + bf1_ref[...], 0.0)                     # (B_blk, Hp) f32

        # ---- fc2 + masked log_softmax (padded class lanes -> -1e30) ----
        logits = jnp.dot(h3.astype(jnp.bfloat16), wf2_ref[...],
                         preferred_element_type=jnp.float32) + bf2_ref[...]
        lane = jax.lax.broadcasted_iota(jnp.int32, logits.shape, 1)
        logits = jnp.where(lane < NC, logits, jnp.full_like(logits, -1e30))
        m = jnp.max(logits, axis=-1, keepdims=True)
        lse = jnp.log(jnp.sum(jnp.exp(logits - m), axis=-1, keepdims=True))
        out_ref[0] = logits - m - lse                                # (B_blk, NCP)

    return kernel


def mov1dcnn_forward(x, params, kernelsize):
    w1, b1, w2, b2, wf1, bf1, wf2, bf2 = params
    B, Cin, L = x.shape
    K = int(kernelsize)
    C1 = w1.shape[0]                   # 124
    C2 = w2.shape[0]                   # 31
    H = wf1.shape[1]                   # 2000
    NC = wf2.shape[1]                  # num_classes
    L1 = (L - K) // 2 + 1              # conv1 (stride 2, VALID)
    L1p = L1 // 2                      # MaxPool1d(2, 2), floor
    L2p = L1p // 2                     # MaxPool1d(2, 2), floor
    assert wf1.shape[0] == C2 * L2p, "in_fc1_size must equal 31 * L2p"

    # Batch blocking: 2 programs on a "parallel" axis -> both v7x TensorCores.
    nB = 2 if (B >= 2 and B % 2 == 0) else 1
    B_blk = B // nB

    # Padded / aligned sizes (contractions -> 128, outputs lane-dense).
    G = _round_up(L2p * B_blk, 8)      # rows per pool-group (sublane aligned)
    CKP = _round_up(Cin * K, 128)      # conv1 contraction  84 -> 128
    C1P = _round_up(C1, 128)           # conv1 channels    124 -> 128
    C2P = _round_up(C2, 32)            # conv2 channels     31 -> 32
    CK2P = _round_up(L2p * C2P, 128)   # fc1 contraction    96 -> 128
    Hp = _round_up(H, 128)             # fc1 width        2000 -> 2048
    NCP = _round_up(NC, 128)           # logit lanes        11 -> 128

    f32, bf16 = jnp.float32, jnp.bfloat16

    # -------- one-time im2col in the wrapper (only surviving positions) --------
    # conv1 position for pooled2 step t, pool2-partner s, pool1-partner q:
    #   c = 4t + 2s + q; its input window starts at 2c (stride 2).
    # Row order (per batch block): q (slow) | s | t | b  -> both pools are a
    # max of the two row-halves, and pooled2 rows come out as t*B_blk + b.
    t_idx = jnp.arange(L2p)
    q_idx = jnp.arange(2)
    s_idx = jnp.arange(2)
    pos = 4 * t_idx[None, None, :] + 2 * s_idx[None, :, None] + q_idx[:, None, None]
    time_idx = 2 * pos[..., None] + jnp.arange(K)            # (2, 2, L2p, K)
    g = x[:, :, time_idx]                                     # (B, Cin, 2, 2, L2p, K)
    g = jnp.transpose(g, (2, 3, 4, 0, 1, 5))                  # (q, s, t, B, Cin, K)
    g = g.reshape(2, 2, L2p, nB, B_blk, Cin * K)
    g = jnp.transpose(g, (3, 0, 1, 2, 4, 5))                  # (nB, q, s, t, b, CinK)
    g = g.reshape(nB, 2, 2, L2p * B_blk, Cin * K)
    g = jnp.pad(g, ((0, 0), (0, 0), (0, 0),
                    (0, G - L2p * B_blk), (0, CKP - Cin * K)))
    patch = g.reshape(nB, 4 * G, CKP).astype(bf16)            # (nB, 4G, 128)

    # -------- weight layout prep (tiny, one-time) --------
    # conv1 weight flattened to (Cin*K, C1P): rows cin*K + k, zero-padded.
    w1_flat = jnp.transpose(w1, (1, 2, 0)).reshape(Cin * K, C1)
    w1_p = jnp.pad(w1_flat, ((0, CKP - Cin * K), (0, C1P - C1))).astype(bf16)
    b1_p = jnp.pad(b1, (0, C1P - C1)).reshape(1, C1P).astype(f32)
    # conv2 (1x1): (C1P, C2P), zero rows/cols for padded channels.
    w2_p = jnp.pad(w2[:, :, 0].T, ((0, C1P - C1), (0, C2P - C2))).astype(bf16)
    b2_p = jnp.pad(b2, (0, C2P - C2)).reshape(1, C2P).astype(f32)
    # fc1: fold the channel-major flatten (b, c*L2p+t) into one (CK2P, Hp) slab
    # laid out to match the kernel's lane-concat activation (b, t*C2P + c).
    wf1_t = jnp.transpose(wf1.reshape(C2, L2p, H), (1, 0, 2))         # (L2p, C2, H)
    wf1_t = jnp.pad(wf1_t, ((0, 0), (0, C2P - C2), (0, Hp - H)))
    wf1_slab = wf1_t.reshape(L2p * C2P, Hp)
    wf1_slab = jnp.pad(wf1_slab, ((0, CK2P - L2p * C2P), (0, 0))).astype(bf16)
    bf1_p = jnp.pad(bf1, (0, Hp - H)).reshape(1, Hp).astype(f32)
    wf2_p = jnp.pad(wf2, ((0, Hp - H), (0, NCP - NC))).astype(bf16)
    bf2_p = jnp.pad(bf2, (0, NCP - NC)).reshape(1, NCP).astype(f32)

    kernel = _make_fused_kernel(G, B_blk, L2p, C2P, CK2P, NC)

    out = pl.pallas_call(
        kernel,
        out_shape=jax.ShapeDtypeStruct((nB, B_blk, NCP), f32),
        grid=(nB,),
        in_specs=[
            pl.BlockSpec((1, 4 * G, CKP), lambda i: (i, 0, 0)),
            pl.BlockSpec((CKP, C1P), lambda i: (0, 0)),
            pl.BlockSpec((1, C1P), lambda i: (0, 0)),
            pl.BlockSpec((C1P, C2P), lambda i: (0, 0)),
            pl.BlockSpec((1, C2P), lambda i: (0, 0)),
            pl.BlockSpec((CK2P, Hp), lambda i: (0, 0)),
            pl.BlockSpec((1, Hp), lambda i: (0, 0)),
            pl.BlockSpec((Hp, NCP), lambda i: (0, 0)),
            pl.BlockSpec((1, NCP), lambda i: (0, 0)),
        ],
        out_specs=pl.BlockSpec((1, B_blk, NCP), lambda i: (i, 0, 0)),
        compiler_params=pltpu.CompilerParams(
            dimension_semantics=("parallel",)),
    )(patch, w1_p, b1_p, w2_p, b2_p, wf1_slab, bf1_p, wf2_p, bf2_p)

    return out.reshape(B, NCP)[:, :NC]


def reference_forward(x, params, kernelsize):
    """Pure-JAX reference matching the PyTorch forward (eval mode, f32 HIGHEST)."""
    w1, b1, w2, b2, wf1, bf1, wf2, bf2 = params
    B = x.shape[0]
    hi = jax.lax.Precision.HIGHEST
    y = jax.lax.conv_general_dilated(
        x, w1, window_strides=(2,), padding="VALID",
        dimension_numbers=("NCH", "OIH", "NCH"), precision=hi)
    y = jnp.maximum(y + b1[None, :, None], 0.0)
    L1 = y.shape[-1]; L1p = L1 // 2
    y = y[:, :, : 2 * L1p].reshape(B, y.shape[1], L1p, 2).max(axis=-1)
    z = jnp.einsum("oc,bcl->bol", w2[:, :, 0], y, precision=hi)
    z = jnp.maximum(z + b2[None, :, None], 0.0)
    L2 = z.shape[-1]; L2p = L2 // 2
    z = z[:, :, : 2 * L2p].reshape(B, z.shape[1], L2p, 2).max(axis=-1)
    flat = z.reshape(B, -1)
    h = jnp.maximum(jnp.dot(flat, wf1, precision=hi) + bf1, 0.0)
    logits = jnp.dot(h, wf2, precision=hi) + bf2
    return jax.nn.log_softmax(logits, axis=1)


if __name__ == "__main__":
    key = jax.random.PRNGKey(0)
    ks = jax.random.split(key, 9)

    # Small shapes consistent with the module (in_channels is fixed at 28).
    B, Cin, L = 2, 28, 32
    kernelsize = 3
    C1, C2, H = 124, 31, 2000
    L1 = (L - kernelsize) // 2 + 1        # 15
    L1p = L1 // 2                         # 7
    L2p = L1p // 2                        # 3
    in_fc1_size = C2 * L2p                # 93

    x = jax.random.normal(ks[0], (B, Cin, L), dtype=jnp.float32)
    w1 = 0.05 * jax.random.normal(ks[1], (C1, Cin, kernelsize), dtype=jnp.float32)
    b1 = 0.05 * jax.random.normal(ks[2], (C1,), dtype=jnp.float32)
    w2 = 0.05 * jax.random.normal(ks[3], (C2, C1, 1), dtype=jnp.float32)
    b2 = 0.05 * jax.random.normal(ks[4], (C2,), dtype=jnp.float32)
    wf1 = 0.02 * jax.random.normal(ks[5], (in_fc1_size, H), dtype=jnp.float32)
    bf1 = 0.02 * jax.random.normal(ks[6], (H,), dtype=jnp.float32)
    wf2 = 0.02 * jax.random.normal(ks[7], (H, NUM_CLASSES), dtype=jnp.float32)
    bf2 = 0.02 * jax.random.normal(ks[8], (NUM_CLASSES,), dtype=jnp.float32)
    params = (w1, b1, w2, b2, wf1, bf1, wf2, bf2)

    fwd = jax.jit(mov1dcnn_forward, static_argnums=(2,))
    out = jax.block_until_ready(fwd(x, params, kernelsize))

    ref = reference_forward(x, params, kernelsize)
    assert out.shape == (B, NUM_CLASSES)
    np.testing.assert_allclose(np.asarray(out), np.asarray(ref), rtol=2e-2, atol=2e-2)
    print("KERNEL_OK")
</pallas_src>

<mosaic_0001>
module attributes {stable_mosaic.version = 11 : i64} {
  func.func @kernel(%arg0: i32, %arg1: memref<1x32x128xbf16, #tpu.memory_space<vmem>>, %arg2: memref<128x128xbf16, #tpu.memory_space<vmem>>, %arg3: memref<1x128xf32, #tpu.memory_space<vmem>>, %arg4: memref<128x32xbf16, #tpu.memory_space<vmem>>, %arg5: memref<1x32xf32, #tpu.memory_space<vmem>>, %arg6: memref<128x2048xbf16, #tpu.memory_space<vmem>>, %arg7: memref<1x2048xf32, #tpu.memory_space<vmem>>, %arg8: memref<2048x128xbf16, #tpu.memory_space<vmem>>, %arg9: memref<1x128xf32, #tpu.memory_space<vmem>>, %arg10: memref<1x1x128xf32, #tpu.memory_space<vmem>>) attributes {dimension_semantics = [#tpu.dimension_semantics<parallel>], iteration_bounds = array<i64: 2>, scalar_prefetch = 0 : i64, scratch_operands = 0 : i64, tpu.core_type = #tpu.core_type<tc>, window_params = [{transform_indices = @transform_0, window_bounds = array<i64: 1, 32, 128>}, {pipeline_mode = #tpu.pipeline_mode<synchronous>, transform_indices = @transform_1, window_bounds = array<i64: 128, 128>}, {pipeline_mode = #tpu.pipeline_mode<synchronous>, transform_indices = @transform_2, window_bounds = array<i64: 1, 128>}, {pipeline_mode = #tpu.pipeline_mode<synchronous>, transform_indices = @transform_3, window_bounds = array<i64: 128, 32>}, {pipeline_mode = #tpu.pipeline_mode<synchronous>, transform_indices = @transform_4, window_bounds = array<i64: 1, 32>}, {pipeline_mode = #tpu.pipeline_mode<synchronous>, transform_indices = @transform_5, window_bounds = array<i64: 128, 2048>}, {pipeline_mode = #tpu.pipeline_mode<synchronous>, transform_indices = @transform_6, window_bounds = array<i64: 1, 2048>}, {pipeline_mode = #tpu.pipeline_mode<synchronous>, transform_indices = @transform_7, window_bounds = array<i64: 2048, 128>}, {pipeline_mode = #tpu.pipeline_mode<synchronous>, transform_indices = @transform_8, window_bounds = array<i64: 1, 128>}, {transform_indices = @transform_9, window_bounds = array<i64: 1, 1, 128>}]} {
    %c0 = arith.constant 0 : index
    %c0_0 = arith.constant 0 : index
    %c0_1 = arith.constant 0 : index
    %0 = vector.load %arg1[%c0, %c0_0, %c0_1] : memref<1x32x128xbf16, #tpu.memory_space<vmem>>, vector<1x32x128xbf16>
    %1 = vector.shape_cast %0 : vector<1x32x128xbf16> to vector<32x128xbf16>
    %c0_2 = arith.constant 0 : index
    %c0_3 = arith.constant 0 : index
    %2 = vector.load %arg2[%c0_2, %c0_3] : memref<128x128xbf16, #tpu.memory_space<vmem>>, vector<128x128xbf16>
    %cst = arith.constant dense<0.000000e+00> : vector<32x128xf32>
    %3 = tpu.matmul %1, %2, %cst {dimension_numbers = #tpu.dot_dimension_numbers<[1], [0], [0], [1], [0, 0, 1, 1], [], []>} : vector<32x128xbf16>, vector<128x128xbf16>, vector<32x128xf32> -> vector<32x128xf32>
    %c0_4 = arith.constant 0 : index
    %c0_5 = arith.constant 0 : index
    %4 = vector.load %arg3[%c0_4, %c0_5] : memref<1x128xf32, #tpu.memory_space<vmem>>, vector<1x128xf32>
    %5 = vector.broadcast %4 : vector<1x128xf32> to vector<32x128xf32>
    %6 = arith.addf %3, %5 : vector<32x128xf32>
    %cst_6 = arith.constant 0.000000e+00 : f32
    %7 = vector.broadcast %cst_6 : f32 to vector<32x128xf32>
    %8 = arith.maximumf %6, %7 : vector<32x128xf32>
    %9 = vector.extract_strided_slice %8 {offsets = [0, 0], sizes = [16, 128], strides = [1, 1]} : vector<32x128xf32> to vector<16x128xf32>
    %10 = vector.extract_strided_slice %8 {offsets = [16, 0], sizes = [16, 128], strides = [1, 1]} : vector<32x128xf32> to vector<16x128xf32>
    %11 = arith.maximumf %9, %10 : vector<16x128xf32>
    %12 = arith.truncf %11 : vector<16x128xf32> to vector<16x128xbf16>
    %c0_7 = arith.constant 0 : index
    %c0_8 = arith.constant 0 : index
    %13 = vector.load %arg4[%c0_7, %c0_8] : memref<128x32xbf16, #tpu.memory_space<vmem>>, vector<128x32xbf16>
    %cst_9 = arith.constant dense<0.000000e+00> : vector<16x32xf32>
    %14 = tpu.matmul %12, %13, %cst_9 {dimension_numbers = #tpu.dot_dimension_numbers<[1], [0], [0], [1], [0, 0, 1, 1], [], []>} : vector<16x128xbf16>, vector<128x32xbf16>, vector<16x32xf32> -> vector<16x32xf32>
    %c0_10 = arith.constant 0 : index
    %c0_11 = arith.constant 0 : index
    %15 = vector.load %arg5[%c0_10, %c0_11] : memref<1x32xf32, #tpu.memory_space<vmem>>, vector<1x32xf32>
    %16 = vector.broadcast %15 : vector<1x32xf32> to vector<16x32xf32>
    %17 = arith.addf %14, %16 : vector<16x32xf32>
    %cst_12 = arith.constant 0.000000e+00 : f32
    %18 = vector.broadcast %cst_12 : f32 to vector<16x32xf32>
    %19 = arith.maximumf %17, %18 : vector<16x32xf32>
    %20 = vector.extract_strided_slice %19 {offsets = [0, 0], sizes = [8, 32], strides = [1, 1]} : vector<16x32xf32> to vector<8x32xf32>
    %21 = vector.extract_strided_slice %19 {offsets = [8, 0], sizes = [8, 32], strides = [1, 1]} : vector<16x32xf32> to vector<8x32xf32>
    %22 = arith.maximumf %20, %21 : vector<8x32xf32>
    %23 = vector.extract_strided_slice %22 {offsets = [0, 0], sizes = [1, 32], strides = [1, 1]} : vector<8x32xf32> to vector<1x32xf32>
    %24 = vector.extract_strided_slice %22 {offsets = [1, 0], sizes = [1, 32], strides = [1, 1]} : vector<8x32xf32> to vector<1x32xf32>
    %25 = vector.extract_strided_slice %22 {offsets = [2, 0], sizes = [1, 32], strides = [1, 1]} : vector<8x32xf32> to vector<1x32xf32>
    %cst_13 = arith.constant 0.000000e+00 : f32
    %26 = vector.broadcast %cst_13 : f32 to vector<1x32xf32>
    %27 = tpu.concatenate %23, %24, %25, %26 in 1 : vector<1x32xf32>, vector<1x32xf32>, vector<1x32xf32>, vector<1x32xf32> -> vector<1x128xf32>
    %28 = arith.truncf %27 : vector<1x128xf32> to vector<1x128xbf16>
    %c0_14 = arith.constant 0 : index
    %c0_15 = arith.constant 0 : index
    %29 = vector.load %arg6[%c0_14, %c0_15] : memref<128x2048xbf16, #tpu.memory_space<vmem>>, vector<128x2048xbf16>
    %cst_16 = arith.constant dense<0.000000e+00> : vector<1x2048xf32>
    %30 = tpu.matmul %28, %29, %cst_16 {dimension_numbers = #tpu.dot_dimension_numbers<[1], [0], [0], [1], [0, 0, 1, 1], [], []>} : vector<1x128xbf16>, vector<128x2048xbf16>, vector<1x2048xf32> -> vector<1x2048xf32>
    %c0_17 = arith.constant 0 : index
    %c0_18 = arith.constant 0 : index
    %31 = vector.load %arg7[%c0_17, %c0_18] : memref<1x2048xf32, #tpu.memory_space<vmem>>, vector<1x2048xf32>
    %32 = arith.addf %30, %31 : vector<1x2048xf32>
    %cst_19 = arith.constant 0.000000e+00 : f32
    %33 = vector.broadcast %cst_19 : f32 to vector<1x2048xf32>
    %34 = arith.maximumf %32, %33 : vector<1x2048xf32>
    %35 = arith.truncf %34 : vector<1x2048xf32> to vector<1x2048xbf16>
    %c0_20 = arith.constant 0 : index
    %c0_21 = arith.constant 0 : index
    %36 = vector.load %arg8[%c0_20, %c0_21] : memref<2048x128xbf16, #tpu.memory_space<vmem>>, vector<2048x128xbf16>
    %cst_22 = arith.constant dense<0.000000e+00> : vector<1x128xf32>
    %37 = tpu.matmul %35, %36, %cst_22 {dimension_numbers = #tpu.dot_dimension_numbers<[1], [0], [0], [1], [0, 0, 1, 1], [], []>} : vector<1x2048xbf16>, vector<2048x128xbf16>, vector<1x128xf32> -> vector<1x128xf32>
    %c0_23 = arith.constant 0 : index
    %c0_24 = arith.constant 0 : index
    %38 = vector.load %arg9[%c0_23, %c0_24] : memref<1x128xf32, #tpu.memory_space<vmem>>, vector<1x128xf32>
    %39 = arith.addf %37, %38 : vector<1x128xf32>
    %40 = tpu.iota {dimensions = array<i32: 1>} : vector<1x128xi32>
    %c11_i32 = arith.constant 11 : i32
    %41 = vector.broadcast %c11_i32 : i32 to vector<1x128xi32>
    %42 = arith.cmpi slt, %40, %41 : vector<1x128xi32>
    %cst_25 = arith.constant -1.000000e+30 : f32
    %43 = vector.broadcast %cst_25 : f32 to vector<1x128xf32>
    %44 = arith.select %42, %39, %43 : vector<1x128xi1>, vector<1x128xf32>
    %cst_26 = arith.constant dense<0xFF800000> : vector<1xf32>
    %45 = vector.multi_reduction <maximumf>, %44, %cst_26 [1] : vector<1x128xf32> to vector<1xf32>
    %46 = vector.shape_cast %45 : vector<1xf32> to vector<1x1xf32>
    %47 = vector.broadcast %46 : vector<1x1xf32> to vector<1x128xf32>
    %48 = arith.subf %44, %47 : vector<1x128xf32>
    %49 = math.exp %48 : vector<1x128xf32>
    %cst_27 = arith.constant dense<0.000000e+00> : vector<1xf32>
    %50 = vector.multi_reduction <add>, %49, %cst_27 [1] : vector<1x128xf32> to vector<1xf32>
    %51 = vector.shape_cast %50 : vector<1xf32> to vector<1x1xf32>
    %52 = math.log %51 : vector<1x1xf32>
    %53 = vector.broadcast %46 : vector<1x1xf32> to vector<1x128xf32>
    %54 = arith.subf %44, %53 : vector<1x128xf32>
    %55 = vector.broadcast %52 : vector<1x1xf32> to vector<1x128xf32>
    %56 = arith.subf %54, %55 : vector<1x128xf32>
    %c0_28 = arith.constant 0 : index
    %c0_29 = arith.constant 0 : index
    %c0_30 = arith.constant 0 : index
    %57 = vector.load %arg10[%c0_28, %c0_29, %c0_30] : memref<1x1x128xf32, #tpu.memory_space<vmem>>, vector<1x1x128xf32>
    %58 = vector.shape_cast %57 : vector<1x1x128xf32> to vector<1x128xf32>
    %59 = vector.shape_cast %56 : vector<1x128xf32> to vector<1x1x128xf32>
    tpu.vector_store %arg10[%c0_28, %c0_29, %c0_30], %59 {strides = array<i32>} : memref<1x1x128xf32, #tpu.memory_space<vmem>>, vector<1x1x128xf32>,
    return
  }
  func.func @transform_0(%arg0: i32) -> (i32, i32, i32) {
    %c0_i32 = arith.constant 0 : i32
    %c0_i32_0 = arith.constant 0 : i32
    %c0_i32_1 = arith.constant 0 : i32
    return %arg0, %c0_i32, %c0_i32_0 : i32, i32, i32
  }
  func.func @transform_1(%arg0: i32) -> (i32, i32) {
    %c0_i32 = arith.constant 0 : i32
    %c0_i32_0 = arith.constant 0 : i32
    %c0_i32_1 = arith.constant 0 : i32
    return %c0_i32, %c0_i32_0 : i32, i32
  }
  func.func @transform_2(%arg0: i32) -> (i32, i32) {
    %c0_i32 = arith.constant 0 : i32
    %c0_i32_0 = arith.constant 0 : i32
    %c0_i32_1 = arith.constant 0 : i32
    return %c0_i32, %c0_i32_0 : i32, i32
  }
  func.func @transform_3(%arg0: i32) -> (i32, i32) {
    %c0_i32 = arith.constant 0 : i32
    %c0_i32_0 = arith.constant 0 : i32
    %c0_i32_1 = arith.constant 0 : i32
    return %c0_i32, %c0_i32_0 : i32, i32
  }
  func.func @transform_4(%arg0: i32) -> (i32, i32) {
    %c0_i32 = arith.constant 0 : i32
    %c0_i32_0 = arith.constant 0 : i32
    %c0_i32_1 = arith.constant 0 : i32
    return %c0_i32, %c0_i32_0 : i32, i32
  }
  func.func @transform_5(%arg0: i32) -> (i32, i32) {
    %c0_i32 = arith.constant 0 : i32
    %c0_i32_0 = arith.constant 0 : i32
    %c0_i32_1 = arith.constant 0 : i32
    return %c0_i32, %c0_i32_0 : i32, i32
  }
  func.func @transform_6(%arg0: i32) -> (i32, i32) {
    %c0_i32 = arith.constant 0 : i32
    %c0_i32_0 = arith.constant 0 : i32
    %c0_i32_1 = arith.constant 0 : i32
    return %c0_i32, %c0_i32_0 : i32, i32
  }
  func.func @transform_7(%arg0: i32) -> (i32, i32) {
    %c0_i32 = arith.constant 0 : i32
    %c0_i32_0 = arith.constant 0 : i32
    %c0_i32_1 = arith.constant 0 : i32
    return %c0_i32, %c0_i32_0 : i32, i32
  }
  func.func @transform_8(%arg0: i32) -> (i32, i32) {
    %c0_i32 = arith.constant 0 : i32
    %c0_i32_0 = arith.constant 0 : i32
    %c0_i32_1 = arith.constant 0 : i32
    return %c0_i32, %c0_i32_0 : i32, i32
  }
  func.func @transform_9(%arg0: i32) -> (i32, i32, i32) {
    %c0_i32 = arith.constant 0 : i32
    %c0_i32_0 = arith.constant 0 : i32
    %c0_i32_1 = arith.constant 0 : i32
    return %arg0, %c0_i32, %c0_i32_0 : i32, i32, i32
  }
}

</mosaic_0001>

<bundles_post_ra>
// kernel: mov1dcnn_forward.1
= control target key start
LH: loop header
LB: loop body
LE: loop exit
PB: predicated region body
PF: predicated region fallthrough
CT: control target
= control target key end

     0   :  { %14 = vsyncpa [#allocation3], 0  ;;  %s5873_s0 = inlined_call_operand.vmem [shape: bf16[2,32,128], index: 0, kind: input, shape index: {}]   ;;  %s5874_s1 = inlined_call_operand.vmem [shape: bf16[128,128], index: 1, kind: input, shape index: {}]   ;;  %s5875_s2 = inlined_call_operand.vmem [shape: f32[1,128], index: 2, kind: input, shape index: {}]   ;;  %s5876_s3 = inlined_call_operand.vmem [shape: bf16[128,32], index: 3, kind: input, shape index: {}]   ;;  %s5877_s4 = inlined_call_operand.vmem [shape: f32[1,32], index: 4, kind: input, shape index: {}]   ;;  %s5878_s5 = inlined_call_operand.vmem [shape: bf16[128,2048], index: 5, kind: input, shape index: {}]   ;;  %s5879_s6 = inlined_call_operand.vmem [shape: f32[1,2048], index: 6, kind: input, shape index: {}]   ;;  %s5880_s7 = inlined_call_operand.vmem [shape: bf16[2048,128], index: 7, kind: input, shape index: {}]   ;;  %s5881_s8 = inlined_call_operand.vmem [shape: f32[1,128], index: 8, kind: input, shape index: {}]   ;;  %s5882_s9 = inlined_call_operand.hbm [shape: f32[2,1,128], index: 9, kind: output, shape index: {}]  }
   0x1   :  { %16 = vsyncpa [#allocation3 + $0x1], 0  ;;  %s4494_s30 = smov 0   ;;  %s4496_s10 = smov 0  }
   0x2   :  { %s4498_s11 = smov 0   ;;  %s4500_s12 = smov 0  }
   0x3 LB: > { %s4515_s13 = sadd.s32 4294967295, %s4440_s12   ;;  %s2904_s14 = sadd.s32 4294967294, %s4440_s12   ;;  %s4440_s12 = sphi %s4500_s12, %s5890_s12   ;;  %s4436_s11 = sphi %s4498_s11, %s5889_s11   ;;  %s4432_s10 = sphi %s4496_s10, %s5888_s10   ;;  %s4428_s30 = sphi %s4494_s30, %s5887_s30  }
   0x4   : > { %s4519_s15 = sadd.s32 1, %s4440_s12   ;;  %s223_s16 = sadd.s32 1, %s4436_s11 }
   0x5   : > { %s220_s17 = ssub.s32 %s4440_s12, %s4519_s15  ;;  %p233_p0 = scmp.ne.s32.totalorder %s4436_s11, %s4432_s10 }
   0x6   : > { %p221_p1 = scmp.eq.s32.totalorder %s220_s17, 0  ;;  %p234_p2 = scmp.eq.s32.totalorder %s4515_s13, 1 }
   0x7   : > { %p239_p3 = scmp.ne.s32.totalorder %s4432_s10, %s4428_s30  ;;  %p240_p4 = scmp.eq.s32.totalorder %s2904_s14, 1 }
   0x8   : > { %s4530_s18 = scalar_select %p221_p1, %s4436_s11, %s223_s16  }
   0x9   : > { %p4532_p5 = por %p234_p2, %p233_p0  ;;  %p4536_p6 = por %p240_p4, %p239_p3 }
   0xa   : > { %p2907_p7 = scmp.ge.s32.totalorder %s4440_s12, 1  ;;  %p290_p8 = scmp.lt.s32.totalorder %s4440_s12, 3 }
   0xc   : > { %p291_p9 = pnand %p2907_p7, %p290_p8 }
   0xd   : > { %p325_p10 = scmp.lt.s32.totalorder (!%p291_p9), %s4515_s13, 1  ;;  %s4442_s17 = smov (!%p291_p9), 32  }
   0xe   : > { %294 = sbr.rel (%p291_p9) target bundleno = 1081 (0x439), region = 56  ;;  %s4443_s25 = smov (!%p291_p9), 64  }
   0xf   : > { %s323_s22 = sand.u32 (!%p291_p9), 1, %s4432_s10  }
  0x10   : > { %s324_s26 = scalar_lea.vmem (!%p291_p9), [#allocation2], %s323_s22 }
  0x11   : > { %s2847_s27 = sshll.u32 (!%p291_p9), %s324_s26, 4  ;;  %s2848_s27 = int_to_ptr.vmem [resolvable:$true] %s2847_s27 }
  0x13   : > { %v4066_v0 = vld [vmem:[%s5874_s1 + $0x38] sm:$0xff]  ;;  %v4065_v1 = vld [vmem:[%s5874_s1 + $0x30] sm:$0xff]  ;;  %v4064_v2 = vld [vmem:[%s5874_s1 + $0x28] sm:$0xff]  ;;  %s326_s21 = scalar_select %p325_p10, %s4515_s13, 1  ;;  %vm534_vm0 = vcmask 261120   ;;  %vm536_vm1 = vcmask 523264  }
  0x14   : > { %414 = vmatpush.bf16.msra.mxu0 %v4066_v0  ;;  %v4063_v3 = vld [vmem:[%s5874_s1 + $0x20] sm:$0xff]  ;;  %v4062_v4 = vld [vmem:[%s5874_s1 + $0x18] sm:$0xff]  ;;  %v4061_v5 = vld [vmem:[%s5874_s1 + $0x10] sm:$0xff]  ;;  %vm538_vm2 = vcmask 785408   ;;  %vm2822_vm5 = vcmask 1040384  }
  0x15   : > { %v4060_v6 = vld [vmem:[%s5874_s1 + $0x8] sm:$0xff]  ;;  %s4056_s24 = sshll.u32 %s326_s21, 4  ;;  %v4059_v7 = vld [vmem:[%s5874_s1] sm:$0xff]  ;;  %v4074_v10 = vld [vmem:[%s5876_s3 + $0x38] sm:$0xff] }
  0x16   : > { %s329_s29 = scalar_lea.vmem %s5873_s0, %s4056_s24  ;;  %508 = vmatpush.bf16.msra.mxu1 %v4074_v10  ;;  %v4073_v11 = vld [vmem:[%s5876_s3 + $0x30] sm:$0xff]  ;;  %v4072_v12 = vld [vmem:[%s5876_s3 + $0x28] sm:$0xff]  ;;  %v4071_v13 = vld [vmem:[%s5876_s3 + $0x20] sm:$0xff] }
  0x17   : > { %v4057_v8 = vld [vmem:[%s329_s29] sm:$0xff]  ;;  %v4058_v9 = vld [vmem:[%s329_s29 + $0x8] sm:$0xff]  ;;  %v4070_v14 = vld [vmem:[%s5876_s3 + $0x18] sm:$0xff]  ;;  %s2837_s29 = scalar_lea.sflag [#allocation3], %s323_s22 }
  0x18   : > { %415 = vmatpush.bf16.msra.mxu0 %v4065_v1  ;;  %v4069_v15 = vld [vmem:[%s5876_s3 + $0x10] sm:$0xff]  ;;  %v4068_v16 = vld [vmem:[%s5876_s3 + $0x8] sm:$0xff]  ;;  %v4067_v17 = vld [vmem:[%s5876_s3] sm:$0xff] }
  0x19   : > { %v4372_v21 = vld [vmem:[%s5875_s2] ss:$0 sm:$0xff]  ;;  %v4187_v36 = vld [vmem:[%s5878_s5 + $0x384] sm:$0xf]  ;;  %v3440_v39 = vld [vmem:[%s5878_s5 + $0x388] sm:$0xf] }
  0x1a   : > { %509 = vmatpush.bf16.msra.mxu1 %v4073_v11  ;;  %v3432_v34 = vld [vmem:[%s5878_s5 + $0x380] sm:$0xf]  ;;  %v3434_v38 = vld [vmem:[%s5878_s5 + $0x3c0] sm:$0xf0]  ;;  %v4196_v40 = vld [vmem:[%s5878_s5 + $0x3c4] sm:$0xf0] }
  0x1b   : > { %v4195_v35 = vld [vmem:[%s5878_s5 + $0x3bc] sm:$0xf0]  ;;  %v3437_v41 = vor.u32 %v4187_v36, %v3434_v38  ;;  %v3441_v42 = vor.u32 %v4196_v40, %v3440_v39  ;;  %v4188_v43 = vld [vmem:[%s5878_s5 + $0x38c] sm:$0xf]  ;;  %v4171_v48 = vld [vmem:[%s5878_s5 + $0x304] sm:$0xf] }
  0x1c   : > { %416 = vmatpush.bf16.msra.mxu0 %v4064_v2  ;;  %v3433_v37 = vor.u32 %v4195_v35, %v3432_v34  ;;  %v3442_v44 = vld [vmem:[%s5878_s5 + $0x3c8] sm:$0xf0]  ;;  %v3368_v45 = vld [vmem:[%s5878_s5 + $0x300] sm:$0xf]  ;;  %v3370_v49 = vld [vmem:[%s5878_s5 + $0x340] sm:$0xf0] }
  0x1d   : > { %v3445_v46 = vor.u32 %v4188_v43, %v3442_v44  ;;  %v4179_v47 = vld [vmem:[%s5878_s5 + $0x33c] sm:$0xf0]  ;;  %1358 = vmatpush.bf16.msra.mxu3 %v3437_v41  ;;  %v3373_v51 = vor.u32 %v4171_v48, %v3370_v49  ;;  %v3376_v52 = vld [vmem:[%s5878_s5 + $0x308] sm:$0xf]  ;;  %v4172_v54 = vld [vmem:[%s5878_s5 + $0x30c] sm:$0xf] }
  0x1e   : > { %510 = vmatpush.bf16.msra.mxu1 %v4072_v12  ;;  %1345 = vmatpush.bf16.msra.mxu2 %v3433_v37  ;;  %v3369_v50 = vor.u32 %v4179_v47, %v3368_v45  ;;  %v4180_v53 = vld [vmem:[%s5878_s5 + $0x344] sm:$0xf0]  ;;  %v3378_v56 = vld [vmem:[%s5878_s5 + $0x348] sm:$0xf0]  ;;  %v3304_v57 = vld [vmem:[%s5878_s5 + $0x280] sm:$0xf] }
  0x1f   : > { %v3377_v55 = vor.u32 %v4180_v53, %v3376_v52  ;;  %v4163_v58 = vld [vmem:[%s5878_s5 + $0x2bc] sm:$0xf0]  ;;  %v3381_v59 = vor.u32 %v4172_v54, %v3378_v56  ;;  %v4155_v60 = vld [vmem:[%s5878_s5 + $0x284] sm:$0xf]  ;;  %v3312_v62 = vld [vmem:[%s5878_s5 + $0x288] sm:$0xf] }
  0x20   : > { %417 = vmatpush.bf16.msra.mxu0 %v4063_v3  ;;  %v3306_v61 = vld [vmem:[%s5878_s5 + $0x2c0] sm:$0xf0]  ;;  %v3305_v0 = vor.u32 %v4163_v58, %v3304_v57  ;;  %v4164_v1 = vld [vmem:[%s5878_s5 + $0x2c4] sm:$0xf0]  ;;  %v4156_v2 = vld [vmem:[%s5878_s5 + $0x28c] sm:$0xf] }
  0x21   : > { %v3314_v3 = vld [vmem:[%s5878_s5 + $0x2c8] sm:$0xf0]  ;;  %1359 = vmatpush.bf16.msra.mxu3 %v3373_v51  ;;  %v3242_v10 = vld [vmem:[%s5878_s5 + $0x240] sm:$0xf0]  ;;  %v3248_v11 = vld [vmem:[%s5878_s5 + $0x208] sm:$0xf] }
  0x22   : > { %511 = vmatpush.bf16.msra.mxu1 %v4071_v13  ;;  %1346 = vmatpush.bf16.msra.mxu2 %v3369_v50  ;;  %v4148_v12 = vld [vmem:[%s5878_s5 + $0x244] sm:$0xf0]  ;;  %v4373_v13 = vld [vmem:[%s5877_s4] ss:$0 sm:$0xff]  ;;  %v4107_v36 = vld [vmem:[%s5878_s5 + $0x104] sm:$0xf] }
  0x23   : > { %v3112_v34 = vld [vmem:[%s5878_s5 + $0x100] sm:$0xf]  ;;  %v3114_v38 = vld [vmem:[%s5878_s5 + $0x140] sm:$0xf0]  ;;  %v3120_v39 = vld [vmem:[%s5878_s5 + $0x108] sm:$0xf] }
  0x24   : > { %418 = vmatpush.bf16.msra.mxu0 %v4062_v4  ;;  %v3309_v4 = vor.u32 %v4155_v60, %v3306_v61  ;;  %v4115_v35 = vld [vmem:[%s5878_s5 + $0x13c] sm:$0xf0]  ;;  %v4116_v40 = vld [vmem:[%s5878_s5 + $0x144] sm:$0xf0]  ;;  %v4108_v43 = vld [vmem:[%s5878_s5 + $0x10c] sm:$0xf]  ;;  %v3117_v47 = vor.u32 %v4107_v36, %v3114_v38 }
  0x25   : > { %v3122_v44 = vld [vmem:[%s5878_s5 + $0x148] sm:$0xf0]  ;;  %v3113_v45 = vor.u32 %v4115_v35, %v3112_v34  ;;  %v3048_v48 = vld [vmem:[%s5878_s5 + $0x80] sm:$0xf]  ;;  %v4091_v50 = vld [vmem:[%s5878_s5 + $0x84] sm:$0xf]  ;;  %v3121_v51 = vor.u32 %v4116_v40, %v3120_v39 }
  0x26   : > { %512 = vmatpush.bf16.msra.mxu1 %v4070_v14  ;;  %v4140_v14 = vld [vmem:[%s5878_s5 + $0x20c] sm:$0xf]  ;;  %1347 = vmatpush.bf16.msra.mxu2 %v3305_v0  ;;  %v4099_v49 = vld [vmem:[%s5878_s5 + $0xbc] sm:$0xf0]  ;;  %v3125_v52 = vor.u32 %v4108_v43, %v3122_v44  ;;  %v3050_v53 = vld [vmem:[%s5878_s5 + $0xc0] sm:$0xf0] }
  0x27   : > { %1360 = vmatpush.bf16.msra.mxu3 %v3309_v4  ;;  %v3056_v54 = vld [vmem:[%s5878_s5 + $0x88] sm:$0xf]  ;;  %v4092_v57 = vld [vmem:[%s5878_s5 + $0x8c] sm:$0xf]  ;;  %v2984_v60 = vld [vmem:[%s5878_s5] sm:$0xf]  ;;  %v3053_v61 = vor.u32 %v4091_v50, %v3050_v53 }
  0x28   : > { %419 = vmatpush.bf16.msra.mxu0 %v4061_v5  ;;  %v3313_v5 = vor.u32 %v4164_v1, %v3312_v62  ;;  %v3058_v58 = vld [vmem:[%s5878_s5 + $0xc8] sm:$0xf0]  ;;  %v4083_v62 = vld [vmem:[%s5878_s5 + $0x3c] sm:$0xf0]  ;;  %v2986_v0 = vld [vmem:[%s5878_s5 + $0x40] sm:$0xf0] }
  0x29   : > { %v4084_v4 = vld [vmem:[%s5878_s5 + $0x44] sm:$0xf0]  ;;  %v3320_v34 = vld [vmem:[%s5878_s5 + $0x290] sm:$0xf]  ;;  %v4157_v38 = vld [vmem:[%s5878_s5 + $0x294] sm:$0xf] }
  0x2a   : > { %513 = vmatpush.bf16.msra.mxu1 %v4069_v15  ;;  %v3250_v15 = vld [vmem:[%s5878_s5 + $0x248] sm:$0xf0]  ;;  %v4165_v35 = vld [vmem:[%s5878_s5 + $0x2cc] sm:$0xf0]  ;;  %v3322_v39 = vld [vmem:[%s5878_s5 + $0x2d0] sm:$0xf0] }
  0x2b   : > { %v3328_v40 = vld [vmem:[%s5878_s5 + $0x298] sm:$0xf]  ;;  %v3330_v43 = vld [vmem:[%s5878_s5 + $0x2d8] sm:$0xf0]  ;;  %v3321_v44 = vor.u32 %v4165_v35, %v3320_v34  ;;  %v4085_v34 = vld [vmem:[%s5878_s5 + $0x4c] sm:$0xf0] }
  0x2c   : > { %420 = vmatpush.bf16.msra.mxu0 %v4060_v6  ;;  %v3240_v6 = vld [vmem:[%s5878_s5 + $0x200] sm:$0xf]  ;;  %v3264_v53 = vld [vmem:[%s5878_s5 + $0x218] sm:$0xf]  ;;  %v4077_v35 = vld [vmem:[%s5878_s5 + $0x14] sm:$0xf] }
  0x2d   : > { %vm5014_vm3 = vmpackc.low %vm538_vm2, %vm538_vm2 }
  0x2e   : > { %514 = vmatpush.bf16.msra.mxu1 %v4068_v16 }
  0x30   : > { %421 = vmatpush.bf16.msra.mxu0 %v4059_v7  ;;  %v4147_v7 = vld [vmem:[%s5878_s5 + $0x23c] sm:$0xf0] }
  0x31   : > { %v3241_v16 = vor.u32 %v4147_v7, %v3240_v6  ;;  %v2994_v6 = vld [vmem:[%s5878_s5 + $0x48] sm:$0xf0]  ;;  %v3448_v7 = vld [vmem:[%s5878_s5 + $0x390] sm:$0xf] }
  0x32   : > { %515 = vmatpush.bf16.msra.mxu1 %v4067_v17 }
  0x33   : > { %422 = vmatmul.bf16.vlgmr.msra.gmra.mxu0 %v4057_v8  ;;  %v4139_v8 = vld [vmem:[%s5878_s5 + $0x204] sm:$0xf]  ;;  %1348 = vmatpush.bf16.msra.mxu2 %v3241_v16  ;;  %v3458_v16 = vld [vmem:[%s5878_s5 + $0x3d8] sm:$0xf0] }
  0x34   : > { %1371 = vmatpush.bf16.msrb.mxu0 %v3441_v42  ;;  %v3245_v17 = vor.u32 %v4139_v8, %v3242_v10  ;;  %v4197_v8 = vld [vmem:[%s5878_s5 + $0x3cc] sm:$0xf0]  ;;  %v4189_v10 = vld [vmem:[%s5878_s5 + $0x394] sm:$0xf] }
  0x36   : > { %1384 = vmatpush.bf16.msrb.mxu1 %v3445_v46  ;;  %1361 = vmatpush.bf16.msra.mxu3 %v3245_v17 }
  0x38   : > { %1372 = vmatpush.bf16.msrb.mxu0 %v3377_v55  ;;  %v4100_v55 = vld [vmem:[%s5878_s5 + $0xc4] sm:$0xf0] }
  0x39   : > { %v3057_v1 = vor.u32 %v4100_v55, %v3056_v54  ;;  %v4150_v54 = vld [vmem:[%s5878_s5 + $0x254] sm:$0xf0]  ;;  %v4142_v55 = vld [vmem:[%s5878_s5 + $0x21c] sm:$0xf] }
  0x3a   : > { %1385 = vmatpush.bf16.msrb.mxu1 %v3381_v59  ;;  %v3049_v59 = vor.u32 %v4099_v49, %v3048_v48  ;;  %v4149_v48 = vld [vmem:[%s5878_s5 + $0x24c] sm:$0xf0] }
  0x3c   : > { %1373 = vmatpush.bf16.msrb.mxu0 %v3313_v5  ;;  %v4076_v5 = vld [vmem:[%s5878_s5 + $0xc] sm:$0xf] }
  0x43   : > { %427 = vmatmul.bf16.gmra.mxu0 %v4058_v9  ;;  %v3317_v9 = vor.u32 %v4156_v2, %v3314_v3  ;;  %v3061_v2 = vor.u32 %v4092_v57, %v3058_v58  ;;  %v2992_v3 = vld [vmem:[%s5878_s5 + $0x8] sm:$0xf] }
  0x44   : > { %v2993_v17 = vor.u32 %v4084_v4, %v2992_v3  ;;  %v4126_v3 = vld [vmem:[%s5878_s5 + $0x19c] sm:$0xf] }
  0x45   : > { %1386 = vmatpush.bf16.msrb.mxu1 %v3317_v9  ;;  %v2985_v9 = vor.u32 %v4083_v62, %v2984_v60  ;;  %v4133_v60 = vld [vmem:[%s5878_s5 + $0x1cc] sm:$0xf0]  ;;  %v3202_v4 = vld [vmem:[%s5878_s5 + $0x1d8] sm:$0xf0] }
  0xb0   : > { %v423_v18 = vpop.f32.mrf.mxu0 }
  0xb1   : > { %v424_v23 = vadd.f32 %v4372_v21, %v423_v18  ;;  %v3249_v18 = vor.u32 %v4148_v12, %v3248_v11  ;;  %v3450_v11 = vld [vmem:[%s5878_s5 + $0x3d0] sm:$0xf0]  ;;  %v3456_v12 = vld [vmem:[%s5878_s5 + $0x398] sm:$0xf] }
  0xb3   : > { %v433_v28 = vmax.f32 %v424_v23, 0.0  ;;  %v3178_v23 = vld [vmem:[%s5878_s5 + $0x1c0] sm:$0xf0]  ;;  %1374 = vmatpush.bf16.msrb.mxu0 %v3249_v18  ;;  %v2997_v18 = vor.u32 %v4076_v5, %v2994_v6 }
  0xb8   : > { %v425_v19 = vpop.f32.mrf.mxu0 }
  0xb9   : > { %v426_v24 = vadd.f32 %v4372_v21, %v425_v19  ;;  %v3176_v19 = vld [vmem:[%s5878_s5 + $0x180] sm:$0xf] }
  0xbb   : > { %v434_v29 = vmax.f32 %v426_v24, 0.0  ;;  %v3184_v24 = vld [vmem:[%s5878_s5 + $0x188] sm:$0xf] }
  0xc0   : > { %v428_v20 = vpop.f32.mrf.mxu0 }
  0xc1   : > { %v429_v22 = vadd.f32 %v4372_v21, %v428_v20  ;;  %v4131_v20 = vld [vmem:[%s5878_s5 + $0x1bc] sm:$0xf0] }
  0xc3   : > { %v435_v26 = vmax.f32 %v429_v22, 0.0  ;;  %v3253_v22 = vor.u32 %v4140_v14, %v3250_v15  ;;  %v4198_v14 = vld [vmem:[%s5878_s5 + $0x3d4] sm:$0xf0]  ;;  %v4190_v15 = vld [vmem:[%s5878_s5 + $0x39c] sm:$0xf] }
  0xc5   : > { %v437_v31 = vmax.f32 %v433_v28, %v435_v26  ;;  %v3186_v28 = vld [vmem:[%s5878_s5 + $0x1c8] sm:$0xf0]  ;;  %1387 = vmatpush.bf16.msrb.mxu1 %v3253_v22  ;;  %v3384_v22 = vld [vmem:[%s5878_s5 + $0x310] sm:$0xf] }
  0xc8   : > { %v430_v25 = vpop.f32.mrf.mxu0 }
  0xc9   : > { %v431_v27 = vadd.f32 %v4372_v21, %v430_v25  ;;  %v4123_v21 = vld [vmem:[%s5878_s5 + $0x184] sm:$0xf]  ;;  %v4132_v25 = vld [vmem:[%s5878_s5 + $0x1c4] sm:$0xf0] }
  0xcb   : > { %v436_v30 = vmax.f32 %v431_v27, 0.0  ;;  %v4124_v27 = vld [vmem:[%s5878_s5 + $0x18c] sm:$0xf] }
  0xcc   : > { %v3189_v37 = vor.u32 %v4124_v27, %v3186_v28  ;;  %v3386_v27 = vld [vmem:[%s5878_s5 + $0x350] sm:$0xf0]  ;;  %v3392_v28 = vld [vmem:[%s5878_s5 + $0x318] sm:$0xf] }
  0xcd   : > { %v438_v32 = vmax.f32 %v434_v29, %v436_v30  ;;  %v3177_v30 = vor.u32 %v4131_v20, %v3176_v19  ;;  %v3449_v20 = vor.u32 %v4197_v8, %v3448_v7  ;;  %v3205_v8 = vor.u32 %v4126_v3, %v3202_v4  ;;  %v3408_v3 = vld [vmem:[%s5878_s5 + $0x328] sm:$0xf] }
  0xce   : > { %1388 = vmatpush.bf16.msrb.mxu1 %v3189_v37  ;;  %v4184_v4 = vld [vmem:[%s5878_s5 + $0x364] sm:$0xf0] }
  0xcf   : > { %v439_v33 = vpack.c.bf16 %v438_v32, %v437_v31  ;;  %v3181_v32 = vor.u32 %v4123_v21, %v3178_v23  ;;  %1349 = vmatpush.bf16.msra.mxu2 %v3177_v30  ;;  %v3453_v21 = vor.u32 %v4189_v10, %v3450_v11  ;;  %v4181_v23 = vld [vmem:[%s5878_s5 + $0x34c] sm:$0xf0]  ;;  %v4174_v30 = vld [vmem:[%s5878_s5 + $0x31c] sm:$0xf]  ;;  %v4109_v11 = vld [vmem:[%s5878_s5 + $0x114] sm:$0xf] }
  0xd0   : > { %v4117_v10 = vld [vmem:[%s5878_s5 + $0x14c] sm:$0xf0] }
  0xd1   : > { %516 = vmatmul.bf16.vlgmr.msra.gmra.mxu1 %v439_v33  ;;  %v3185_v33 = vor.u32 %v4132_v25, %v3184_v24  ;;  %1362 = vmatpush.bf16.msra.mxu3 %v3181_v32  ;;  %v3457_v24 = vor.u32 %v4198_v14, %v3456_v12  ;;  %v3461_v25 = vor.u32 %v4190_v15, %v3458_v16  ;;  %v3136_v14 = vld [vmem:[%s5878_s5 + $0x118] sm:$0xf] }
  0xd2   : > { %1389 = vmatpush.bf16.msrb.mxu1 %v3125_v52  ;;  %v3385_v32 = vor.u32 %v4181_v23, %v3384_v22  ;;  %v3258_v52 = vld [vmem:[%s5878_s5 + $0x250] sm:$0xf0]  ;;  %v4118_v15 = vld [vmem:[%s5878_s5 + $0x154] sm:$0xf0]  ;;  %v4101_v22 = vld [vmem:[%s5878_s5 + $0xcc] sm:$0xf0] }
  0xd3   : > { %1375 = vmatpush.bf16.msrb.mxu0 %v3185_v33  ;;  %1350 = vmatpush.bf16.msra.mxu2 %v3113_v45  ;;  %v3325_v45 = vor.u32 %v4157_v38, %v3322_v39  ;;  %v4093_v23 = vld [vmem:[%s5878_s5 + $0x94] sm:$0xf]  ;;  %v3008_v38 = vld [vmem:[%s5878_s5 + $0x18] sm:$0xf] }
  0xd4   : > { %v4086_v39 = vld [vmem:[%s5878_s5 + $0x54] sm:$0xf0] }
  0xd5   : > { %1363 = vmatpush.bf16.msra.mxu3 %v3117_v47  ;;  %v3256_v47 = vld [vmem:[%s5878_s5 + $0x210] sm:$0xf] }
  0xd6   : > { %1390 = vmatpush.bf16.msrb.mxu1 %v3061_v2  ;;  %v3257_v57 = vor.u32 %v4149_v48, %v3256_v47  ;;  %v4134_v2 = vld [vmem:[%s5878_s5 + $0x1d4] sm:$0xf0]  ;;  %v3464_v47 = vld [vmem:[%s5878_s5 + $0x3a0] sm:$0xf] }
  0xd7   : > { %1376 = vmatpush.bf16.msrb.mxu0 %v3121_v51  ;;  %1351 = vmatpush.bf16.msra.mxu2 %v3049_v59  ;;  %v4141_v51 = vld [vmem:[%s5878_s5 + $0x214] sm:$0xf]  ;;  %v3192_v59 = vld [vmem:[%s5878_s5 + $0x190] sm:$0xf]  ;;  %v4199_v48 = vld [vmem:[%s5878_s5 + $0x3dc] sm:$0xf0] }
  0xd8   : > { %v3261_v58 = vor.u32 %v4141_v51, %v3258_v52  ;;  %v3193_v5 = vor.u32 %v4133_v60, %v3192_v59  ;;  %v3472_v51 = vld [vmem:[%s5878_s5 + $0x3a8] sm:$0xf] }
  0xd9   : > { %1364 = vmatpush.bf16.msra.mxu3 %v3053_v61  ;;  %v3265_v61 = vor.u32 %v4150_v54, %v3264_v53  ;;  %v4200_v54 = vld [vmem:[%s5878_s5 + $0x3e4] sm:$0xf0] }
  0xda   : > { %1391 = vmatpush.bf16.msrb.mxu1 %v2997_v18  ;;  %v4110_v18 = vld [vmem:[%s5878_s5 + $0x11c] sm:$0xf] }
  0xdb   : > { %1377 = vmatpush.bf16.msrb.mxu0 %v3057_v1  ;;  %1352 = vmatpush.bf16.msra.mxu2 %v2985_v9  ;;  %v3200_v1 = vld [vmem:[%s5878_s5 + $0x198] sm:$0xf]  ;;  %v3128_v9 = vld [vmem:[%s5878_s5 + $0x110] sm:$0xf] }
  0xdc   : > { %v3201_v7 = vor.u32 %v4134_v2, %v3200_v1  ;;  %v3129_v12 = vor.u32 %v4117_v10, %v3128_v9  ;;  %v4175_v1 = vld [vmem:[%s5878_s5 + $0x324] sm:$0xf]  ;;  %v3336_v9 = vld [vmem:[%s5878_s5 + $0x2a0] sm:$0xf] }
  0xdd   : > { %v3402_v2 = vld [vmem:[%s5878_s5 + $0x360] sm:$0xf0]  ;;  %v4167_v10 = vld [vmem:[%s5878_s5 + $0x2dc] sm:$0xf0] }
  0xde   : > { %1436 = vmatpush.bf16.msra.mxu1 %v3461_v25 }
  0xdf   : > { %1378 = vmatpush.bf16.msrb.mxu0 %v2993_v17  ;;  %1397 = vmatpush.bf16.msrb.mxu2 %v3449_v20  ;;  %v3137_v17 = vor.u32 %v4118_v15, %v3136_v14  ;;  %v3064_v20 = vld [vmem:[%s5878_s5 + $0x90] sm:$0xf]  ;;  %v3338_v14 = vld [vmem:[%s5878_s5 + $0x2e0] sm:$0xf0]  ;;  %v3344_v15 = vld [vmem:[%s5878_s5 + $0x2a8] sm:$0xf] }
  0xe0   : > { %v3065_v25 = vor.u32 %v4101_v22, %v3064_v20  ;;  %v4151_v22 = vld [vmem:[%s5878_s5 + $0x25c] sm:$0xf0] }
  0xe3   : > { %1423 = vmatpush.bf16.msra.mxu0 %v3457_v24  ;;  %1398 = vmatpush.bf16.msrb.mxu2 %v3385_v32  ;;  %v3066_v24 = vld [vmem:[%s5878_s5 + $0xd0] sm:$0xf0] }
  0xe7   : > { %1399 = vmatpush.bf16.msrb.mxu2 %v3321_v44 }
  0xeb   : > { %1400 = vmatpush.bf16.msrb.mxu2 %v3257_v57 }
  0xef   : > { %1401 = vmatpush.bf16.msrb.mxu2 %v3193_v5  ;;  %v4176_v5 = vld [vmem:[%s5878_s5 + $0x32c] sm:$0xf] }
  0xf3   : > { %1402 = vmatpush.bf16.msrb.mxu2 %v3129_v12 }
  0xf7   : > { %1403 = vmatpush.bf16.msrb.mxu2 %v3065_v25  ;;  %v4143_v25 = vld [vmem:[%s5878_s5 + $0x224] sm:$0xf] }
 0x14e   : > { %v517_v63 = vpop.f32.mrf.mxu1 }
 0x14f   : > { %v518_v26 = vadd.f32 %v4373_v13, %v517_v63  ;;  %v4075_v63 = vld [vmem:[%s5878_s5 + $0x4] sm:$0xf] }
 0x151   : > { %v522_v41 = vmax.f32 %v518_v26, 0.0  ;;  %v4173_v26 = vld [vmem:[%s5878_s5 + $0x314] sm:$0xf] }
 0x152   : > { %v3389_v33 = vor.u32 %v4173_v26, %v3386_v27  ;;  %v3069_v26 = vor.u32 %v4093_v23, %v3066_v24  ;;  %v3072_v27 = vld [vmem:[%s5878_s5 + $0x98] sm:$0xf] }
 0x156   : > { %v519_v29 = vpop.f32.mrf.mxu1 }
 0x157   : > { %v520_v31 = vadd.f32 %v4373_v13, %v519_v29  ;;  %v2989_v13 = vor.u32 %v4075_v63, %v2986_v0  ;;  %v4182_v29 = vld [vmem:[%s5878_s5 + $0x354] sm:$0xf0]  ;;  %v4125_v63 = vld [vmem:[%s5878_s5 + $0x194] sm:$0xf] }
 0x158   : > { %v3393_v36 = vor.u32 %v4182_v29, %v3392_v28  ;;  %v3194_v0 = vld [vmem:[%s5878_s5 + $0x1d0] sm:$0xf0]  ;;  %v4102_v28 = vld [vmem:[%s5878_s5 + $0xd4] sm:$0xf0]  ;;  %v4094_v29 = vld [vmem:[%s5878_s5 + $0x9c] sm:$0xf] }
 0x159   : > { %v523_v42 = vmax.f32 %v520_v31, 0.0  ;;  %1365 = vmatpush.bf16.msra.mxu3 %v2989_v13  ;;  %v3394_v31 = vld [vmem:[%s5878_s5 + $0x358] sm:$0xf0]  ;;  %v3197_v6 = vor.u32 %v4125_v63, %v3194_v0  ;;  %v3130_v13 = vld [vmem:[%s5878_s5 + $0x150] sm:$0xf0]  ;;  %v3473_v63 = vor.u32 %v4200_v54, %v3472_v51 }
 0x15a   : > { %v3397_v37 = vor.u32 %v4174_v30, %v3394_v31  ;;  %1424 = vmatpush.bf16.msra.mxu0 %v3393_v36  ;;  %v3133_v16 = vor.u32 %v4109_v11, %v3130_v13  ;;  %v3073_v30 = vor.u32 %v4102_v28, %v3072_v27  ;;  %v3074_v31 = vld [vmem:[%s5878_s5 + $0xd8] sm:$0xf0]  ;;  %v3409_v11 = vor.u32 %v4184_v4, %v3408_v3  ;;  %v4159_v13 = vld [vmem:[%s5878_s5 + $0x2a4] sm:$0xf]  ;;  %v3280_v27 = vld [vmem:[%s5878_s5 + $0x228] sm:$0xf] }
 0x15b   : > { %v4745_v46 = vmax.f32 %v522_v41, %v523_v42  ;;  %v4166_v41 = vld [vmem:[%s5878_s5 + $0x2d4] sm:$0xf0]  ;;  %v4158_v42 = vld [vmem:[%s5878_s5 + $0x29c] sm:$0xf]  ;;  %v3077_v32 = vor.u32 %v4094_v29, %v3074_v31  ;;  %v3341_v20 = vor.u32 %v4159_v13, %v3338_v14  ;;  %v4152_v28 = vld [vmem:[%s5878_s5 + $0x264] sm:$0xf0] }
 0x15c   : > { %1437 = vmatpush.bf16.msra.mxu1 %v3397_v37  ;;  %v3329_v49 = vor.u32 %v4166_v41, %v3328_v40  ;;  %v3333_v50 = vor.u32 %v4158_v42, %v3330_v43  ;;  %v3002_v37 = vld [vmem:[%s5878_s5 + $0x50] sm:$0xf0]  ;;  %v3009_v41 = vor.u32 %v4086_v39, %v3008_v38  ;;  %v4078_v42 = vld [vmem:[%s5878_s5 + $0x1c] sm:$0xf]  ;;  %v4144_v29 = vld [vmem:[%s5878_s5 + $0x22c] sm:$0xf] }
 0x15d   : > { %v526_v56 = vrot.slane %v4745_v46, 1  ;;  %v530_v19 = vrot.slane %v4745_v46, 2  ;;  %1410 = vmatpush.bf16.msrb.mxu3 %v3453_v21  ;;  %v3005_v40 = vor.u32 %v4077_v35, %v3002_v37  ;;  %v3010_v43 = vld [vmem:[%s5878_s5 + $0x58] sm:$0xf0]  ;;  %v3281_v35 = vor.u32 %v4152_v28, %v3280_v27  ;;  %v4127_v37 = vld [vmem:[%s5878_s5 + $0x1a4] sm:$0xf] }
 0x15e   : > { %1425 = vmatpush.bf16.msra.mxu0 %v3329_v49  ;;  %v3013_v44 = vor.u32 %v4078_v42, %v3010_v43  ;;  %v4191_v49 = vld [vmem:[%s5878_s5 + $0x3a4] sm:$0xf]  ;;  %v3216_v39 = vld [vmem:[%s5878_s5 + $0x1a8] sm:$0xf]  ;;  %v3218_v42 = vld [vmem:[%s5878_s5 + $0x1e8] sm:$0xf0] }
 0x15f   : > { %527 = vrot.lane.b32.xlu0 %v526_v56, %s4442_s17  ;;  %v3266_v56 = vld [vmem:[%s5878_s5 + $0x258] sm:$0xf0]  ;;  %v3210_v38 = vld [vmem:[%s5878_s5 + $0x1e0] sm:$0xf0]  ;;  %v4112_v54 = vld [vmem:[%s5878_s5 + $0x12c] sm:$0xf] }
 0x160   : > { %1438 = vmatpush.bf16.msra.mxu1 %v3333_v50  ;;  %v3269_v62 = vor.u32 %v4142_v55, %v3266_v56  ;;  %v3466_v50 = vld [vmem:[%s5878_s5 + $0x3e0] sm:$0xf0]  ;;  %v4192_v55 = vld [vmem:[%s5878_s5 + $0x3ac] sm:$0xf]  ;;  %v3024_v13 = vld [vmem:[%s5878_s5 + $0x28] sm:$0xf] }
 0x161   : > { %1411 = vmatpush.bf16.msrb.mxu3 %v3389_v33  ;;  %v3000_v33 = vld [vmem:[%s5878_s5 + $0x10] sm:$0xf]  ;;  %v3474_v56 = vld [vmem:[%s5878_s5 + $0x3e8] sm:$0xf0]  ;;  %v3469_v60 = vor.u32 %v4191_v49, %v3466_v50  ;;  %v4111_v50 = vld [vmem:[%s5878_s5 + $0x124] sm:$0xf] }
 0x162   : > { %1426 = vmatpush.bf16.msra.mxu0 %v3265_v61  ;;  %v3001_v36 = vor.u32 %v4085_v34, %v3000_v33  ;;  %v3400_v61 = vld [vmem:[%s5878_s5 + $0x320] sm:$0xf]  ;;  %v3477_v0 = vor.u32 %v4192_v55, %v3474_v56  ;;  %v3146_v51 = vld [vmem:[%s5878_s5 + $0x160] sm:$0xf0]  ;;  %v3154_v55 = vld [vmem:[%s5878_s5 + $0x168] sm:$0xf0] }
 0x163   : > { %v3208_v33 = vld [vmem:[%s5878_s5 + $0x1a0] sm:$0xf]  ;;  %v4096_v3 = vld [vmem:[%s5878_s5 + $0xac] sm:$0xf]  ;;  %v4088_v14 = vld [vmem:[%s5878_s5 + $0x64] sm:$0xf0] }
 0x164   : > { %1439 = vmatpush.bf16.msra.mxu1 %v3269_v62  ;;  %1404 = vmatpush.bf16.msrb.mxu2 %v3001_v36  ;;  %v4183_v62 = vld [vmem:[%s5878_s5 + $0x35c] sm:$0xf0]  ;;  %v3090_v4 = vld [vmem:[%s5878_s5 + $0xe8] sm:$0xf0]  ;;  %v3025_v27 = vor.u32 %v4088_v14, %v3024_v13  ;;  %v4130_v13 = vld [vmem:[%s5878_s5 + $0x1bc] sm:$0xf] }
 0x165   : > { %1412 = vmatpush.bf16.msrb.mxu3 %v3325_v45  ;;  %v4135_v34 = vld [vmem:[%s5878_s5 + $0x1dc] sm:$0xf0]  ;;  %v3234_v14 = vld [vmem:[%s5878_s5 + $0x1f8] sm:$0xf0] }
 0x166   : > { %1427 = vmatpush.bf16.msra.mxu0 %v3201_v7  ;;  %v3401_v7 = vor.u32 %v4183_v62, %v3400_v61  ;;  %v3209_v43 = vor.u32 %v4135_v34, %v3208_v33  ;;  %v3157_v62 = vor.u32 %v4112_v54, %v3154_v55 }
 0x167   : > { %531 = vrot.lane.b32.xlu0 %v530_v19, %s4443_s25  ;;  %v3138_v19 = vld [vmem:[%s5878_s5 + $0x158] sm:$0xf0]  ;;  %s2845_s25 = scalar_lea.hbm %s5882_s9, %s4515_s13  ;;  %s4398_s13 = scalar_lea.hbm %s5882_s9, 2 }
 0x168   : > { %1440 = vmatpush.bf16.msra.mxu1 %v3205_v8  ;;  %v3141_v21 = vor.u32 %v4110_v18, %v3138_v19  ;;  %v3405_v8 = vor.u32 %v4175_v1, %v3402_v2  ;;  %v3346_v18 = vld [vmem:[%s5878_s5 + $0x2e8] sm:$0xf0]  ;;  %v3337_v19 = vor.u32 %v4167_v10, %v3336_v9  ;;  %v3088_v1 = vld [vmem:[%s5878_s5 + $0xa8] sm:$0xf]  ;;  %v4079_v9 = vld [vmem:[%s5878_s5 + $0x24] sm:$0xf] }
 0x169   : > { %1413 = vmatpush.bf16.msrb.mxu3 %v3261_v58  ;;  %v4104_v2 = vld [vmem:[%s5878_s5 + $0xe4] sm:$0xf0]  ;;  %v3018_v10 = vld [vmem:[%s5878_s5 + $0x60] sm:$0xf0]  ;;  %s2849_s28 = sshll.u32 %s2845_s25, 4  ;;  %s2850_s28 = int_to_ptr.hbm [resolvable:$true] %s2849_s28 }
 0x16a   : > { %1428 = vmatpush.bf16.msra.mxu0 %v3137_v17  ;;  %v4160_v17 = vld [vmem:[%s5878_s5 + $0x2ac] sm:$0xf]  ;;  %s4392_s14 = sshra.s32 %s2850_s28, 4  ;;  %s4393_s14 = int_to_ptr.hbm [resolvable:$true] %s4392_s14 }
 0x16b   : > { %v3349_v24 = vor.u32 %v4160_v17, %v3346_v18  ;;  %v3480_v17 = vld [vmem:[%s5878_s5 + $0x3b0] sm:$0xf]  ;;  %v4232_v58 = vld [vmem:[%s5880_s7 + $0xe8] sm:$0xff]  ;;  %s4394_s16 = scalar_lea.hbm %s4393_s14, 1  ;;  %p4399_p0 = scmp.lt.s32.totalorder %s4393_s14, %s5882_s9 }
 0x16c   : > { %1441 = vmatpush.bf16.msra.mxu1 %v3141_v21  ;;  %v3272_v21 = vld [vmem:[%s5878_s5 + $0x220] sm:$0xf]  ;;  %v4201_v18 = vld [vmem:[%s5878_s5 + $0x3ec] sm:$0xf0]  ;;  %p4395_p11 = scmp.ne.s32.totalorder %s4393_s14, %s4394_s16  ;;  %p4400_p1 = scmp.lt.s32.totalorder %s4398_s13, %s4394_s16 }
 0x16d   : > { %1414 = vmatpush.bf16.msrb.mxu3 %v3197_v6  ;;  %v3410_v6 = vld [vmem:[%s5878_s5 + $0x368] sm:$0xf0]  ;;  %v3273_v31 = vor.u32 %v4151_v22, %v3272_v21  ;;  %v3488_v21 = vld [vmem:[%s5878_s5 + $0x3b8] sm:$0xf] }
 0x16e   : > { %1429 = vmatpush.bf16.msra.mxu0 %v3073_v30  ;;  %v3413_v12 = vor.u32 %v4176_v5, %v3410_v6  ;;  %v3282_v30 = vld [vmem:[%s5878_s5 + $0x268] sm:$0xf0]  ;;  %v3016_v5 = vld [vmem:[%s5878_s5 + $0x20] sm:$0xf]  ;;  %p4396_p12 = pnand %p4395_p11, %p4532_p5  ;;  %p4401_p2 = por %p4400_p1, %p4399_p0 }
 0x16f   : > { %v3285_v36 = vor.u32 %v4144_v29, %v3282_v30  ;;  %v3481_v29 = vor.u32 %v4201_v18, %v3480_v17  ;;  %v3160_v17 = vld [vmem:[%s5878_s5 + $0x130] sm:$0xf] }
 0x170   : > { %1442 = vmatpush.bf16.msra.mxu1 %v3077_v32  ;;  %v4121_v18 = vld [vmem:[%s5878_s5 + $0x16c] sm:$0xf0]  ;;  %p4397_p13 = pneg %p4396_p12 }
 0x171   : > { %1415 = vmatpush.bf16.msrb.mxu3 %v3133_v16  ;;  %v4168_v16 = vld [vmem:[%s5878_s5 + $0x2e4] sm:$0xf0] }
 0x172   : > { %1430 = vmatpush.bf16.msra.mxu0 %v3009_v41  ;;  %v3345_v23 = vor.u32 %v4168_v16, %v3344_v15  ;;  %v4128_v41 = vld [vmem:[%s5878_s5 + $0x1ac] sm:$0xf]  ;;  %p4402_p3 = pnand %p4401_p2, %p4397_p13 }
 0x173   : > { %v3221_v49 = vor.u32 %v4128_v41, %v3218_v42  ;;  %v4080_v15 = vld [vmem:[%s5878_s5 + $0x2c] sm:$0xf] }
 0x174   : > { %1443 = vmatpush.bf16.msra.mxu1 %v3013_v44  ;;  %v3213_v44 = vor.u32 %v4127_v37, %v3210_v38  ;;  %v3026_v16 = vld [vmem:[%s5878_s5 + $0x68] sm:$0xf0]  ;;  %v3424_v37 = vld [vmem:[%s5878_s5 + $0x338] sm:$0xf] }
 0x175   : > { %1416 = vmatpush.bf16.msrb.mxu3 %v3069_v26  ;;  %v3274_v26 = vld [vmem:[%s5878_s5 + $0x260] sm:$0xf0]  ;;  %v3029_v28 = vor.u32 %v4080_v15, %v3026_v16  ;;  %v4186_v38 = vld [vmem:[%s5878_s5 + $0x374] sm:$0xf0] }
 0x176   : > { %v3277_v32 = vor.u32 %v4143_v25, %v3274_v26  ;;  %v4194_v25 = vld [vmem:[%s5878_s5 + $0x3bc] sm:$0xf] }
 0x177   : > { %v3490_v26 = vld [vmem:[%s5878_s5 + $0x3f8] sm:$0xf0] }
 0x178   : > { %v3493_v34 = vor.u32 %v4194_v25, %v3490_v26  ;;  %v4114_v25 = vld [vmem:[%s5878_s5 + $0x13c] sm:$0xf] }
 0x179   : > { %1417 = vmatpush.bf16.msrb.mxu3 %v3005_v40  ;;  %v4136_v40 = vld [vmem:[%s5878_s5 + $0x1e4] sm:$0xf0]  ;;  %v3170_v26 = vld [vmem:[%s5878_s5 + $0x178] sm:$0xf0] }
 0x1d1   : > { %v528_v45 = vpop.permute.xlu0 %527 }
 0x1d2   : > { %v535_v52 = vsel %vm534_vm0, %v4745_v46, %v528_v45  ;;  %v3465_v46 = vor.u32 %v4199_v48, %v3464_v47  ;;  %v3144_v45 = vld [vmem:[%s5878_s5 + $0x120] sm:$0xf]  ;;  %v3217_v48 = vor.u32 %v4136_v40, %v3216_v39  ;;  %v4178_v39 = vld [vmem:[%s5878_s5 + $0x33c] sm:$0xf] }
 0x1d3   : > { %v4119_v47 = vld [vmem:[%s5878_s5 + $0x15c] sm:$0xf0]  ;;  %v3426_v40 = vld [vmem:[%s5878_s5 + $0x378] sm:$0xf0] }
 0x1d4   : > { %v3145_v56 = vor.u32 %v4119_v47, %v3144_v45  ;;  %v3425_v45 = vor.u32 %v4186_v38, %v3424_v37  ;;  %v3429_v47 = vor.u32 %v4178_v39, %v3426_v40  ;;  %v4098_v37 = vld [vmem:[%s5878_s5 + $0xbc] sm:$0xf] }
 0x1d5   : > { %v3106_v38 = vld [vmem:[%s5878_s5 + $0xf8] sm:$0xf0] }
 0x1d9   : > { %v532_v53 = vpop.permute.xlu0 %531 }
 0x1da   : > { %v537_v57 = vsel %vm536_vm1, %v535_v52, %v532_v53  ;;  %v3152_v52 = vld [vmem:[%s5878_s5 + $0x128] sm:$0xf] }
 0x1db   : > { %v5018_v59 = vpack.c.bf16 %v537_v57, %v537_v57  ;;  %v4120_v53 = vld [vmem:[%s5878_s5 + $0x164] sm:$0xf0]  ;;  %v3149_v57 = vor.u32 %v4111_v50, %v3146_v51  ;;  %v3360_v50 = vld [vmem:[%s5878_s5 + $0x2b8] sm:$0xf] }
 0x1dc   : > { %v3153_v61 = vor.u32 %v4120_v53, %v3152_v52  ;;  %v4170_v51 = vld [vmem:[%s5878_s5 + $0x2f4] sm:$0xf0]  ;;  %v4162_v52 = vld [vmem:[%s5878_s5 + $0x2bc] sm:$0xf] }
 0x1dd   : > { %3496 = vmatmul.msk.bf16.vlgmr.msra.gmra.mxu2 %vm5014_vm3, %v5018_v59  ;;  %3499 = vmatmul.msk.bf16.vlgmr.msra.gmra.mxu3 %vm5014_vm3, %v5018_v59  ;;  %v3362_v53 = vld [vmem:[%s5878_s5 + $0x2f8] sm:$0xf0] }
 0x1de   : > { %3502 = vmatmul.msk.bf16.vlgmr.msrb.gmra.mxu0 %vm5014_vm3, %v5018_v59  ;;  %3505 = vmatmul.msk.bf16.vlgmr.msrb.gmra.mxu1 %vm5014_vm3, %v5018_v59 }
 0x1df   : > { %1449 = vmatpush.bf16.msra.mxu2 %v3465_v46  ;;  %1462 = vmatpush.bf16.msra.mxu3 %v3469_v60  ;;  %v3080_v46 = vld [vmem:[%s5878_s5 + $0xa0] sm:$0xf] }
 0x1e0   : > { %1475 = vmatpush.bf16.msrb.mxu0 %v3473_v63  ;;  %1488 = vmatpush.bf16.msrb.mxu1 %v3477_v0  ;;  %v4103_v60 = vld [vmem:[%s5878_s5 + $0xdc] sm:$0xf0]  ;;  %v4095_v63 = vld [vmem:[%s5878_s5 + $0xa4] sm:$0xf] }
 0x1e1   : > { %v3082_v0 = vld [vmem:[%s5878_s5 + $0xe0] sm:$0xf0]  ;;  %v3081_v6 = vor.u32 %v4103_v60, %v3080_v46  ;;  %v3361_v46 = vor.u32 %v4170_v51, %v3360_v50  ;;  %v3365_v60 = vor.u32 %v4162_v52, %v3362_v53  ;;  %v4082_v50 = vld [vmem:[%s5878_s5 + $0x3c] sm:$0xf] }
 0x1e2   : > { %v3042_v51 = vld [vmem:[%s5878_s5 + $0x78] sm:$0xf0] }
 0x1e3   : > { %1450 = vmatpush.bf16.msra.mxu2 %v3401_v7  ;;  %1463 = vmatpush.bf16.msra.mxu3 %v3405_v8  ;;  %v3085_v7 = vor.u32 %v4095_v63, %v3082_v0  ;;  %v4087_v8 = vld [vmem:[%s5878_s5 + $0x5c] sm:$0xf0]  ;;  %v3296_v63 = vld [vmem:[%s5878_s5 + $0x238] sm:$0xf] }
 0x1e4   : > { %1476 = vmatpush.bf16.msrb.mxu0 %v3409_v11  ;;  %1489 = vmatpush.bf16.msrb.mxu1 %v3413_v12  ;;  %v3089_v11 = vor.u32 %v4104_v2, %v3088_v1  ;;  %v3093_v12 = vor.u32 %v4096_v3, %v3090_v4  ;;  %v3017_v22 = vor.u32 %v4087_v8, %v3016_v5  ;;  %v4154_v0 = vld [vmem:[%s5878_s5 + $0x274] sm:$0xf0]  ;;  %v4146_v1 = vld [vmem:[%s5878_s5 + $0x23c] sm:$0xf]  ;;  %v3224_v5 = vld [vmem:[%s5878_s5 + $0x1b0] sm:$0xf] }
 0x1e5   : > { %v3298_v2 = vld [vmem:[%s5878_s5 + $0x278] sm:$0xf0] }
 0x1e6   : > { %v3301_v8 = vor.u32 %v4146_v1, %v3298_v2  ;;  %v4224_v1 = vld [vmem:[%s5880_s7 + $0xa8] sm:$0xff] }
 0x1e7   : > { %1451 = vmatpush.bf16.msra.mxu2 %v3337_v19  ;;  %1464 = vmatpush.bf16.msra.mxu3 %v3341_v20  ;;  %v4193_v19 = vld [vmem:[%s5878_s5 + $0x3b4] sm:$0xf]  ;;  %v4216_v2 = vld [vmem:[%s5880_s7 + $0x68] sm:$0xff] }
 0x1e8   : > { %1477 = vmatpush.bf16.msrb.mxu0 %v3345_v23  ;;  %1490 = vmatpush.bf16.msrb.mxu1 %v3349_v24  ;;  %v3482_v20 = vld [vmem:[%s5878_s5 + $0x3f0] sm:$0xf0]  ;;  %v3021_v23 = vor.u32 %v4079_v9, %v3018_v10  ;;  %v4202_v24 = vld [vmem:[%s5878_s5 + $0x3f4] sm:$0xf0] }
 0x1e9   : > { %v3485_v30 = vor.u32 %v4193_v19, %v3482_v20  ;;  %v3489_v33 = vor.u32 %v4202_v24, %v3488_v21  ;;  %v4129_v9 = vld [vmem:[%s5878_s5 + $0x1b4] sm:$0xf]  ;;  %v3237_v20 = vor.u32 %v4130_v13, %v3234_v14  ;;  %v4122_v24 = vld [vmem:[%s5878_s5 + $0x174] sm:$0xf0] }
 0x1ea   : > { %v3226_v10 = vld [vmem:[%s5878_s5 + $0x1f0] sm:$0xf0] }
 0x1eb   : > { %1452 = vmatpush.bf16.msra.mxu2 %v3273_v31  ;;  %1465 = vmatpush.bf16.msra.mxu3 %v3277_v32  ;;  %v3416_v31 = vld [vmem:[%s5878_s5 + $0x330] sm:$0xf]  ;;  %v3229_v16 = vor.u32 %v4129_v9, %v3226_v10  ;;  %v4113_v21 = vld [vmem:[%s5878_s5 + $0x134] sm:$0xf]  ;;  %v4206_v9 = vld [vmem:[%s5880_s7 + $0x18] sm:$0xff] }
 0x1ec   : > { %1478 = vmatpush.bf16.msrb.mxu0 %v3281_v35  ;;  %1491 = vmatpush.bf16.msrb.mxu1 %v3285_v36  ;;  %v4185_v32 = vld [vmem:[%s5878_s5 + $0x36c] sm:$0xf0]  ;;  %v4177_v35 = vld [vmem:[%s5878_s5 + $0x334] sm:$0xf]  ;;  %v4214_v10 = vld [vmem:[%s5880_s7 + $0x58] sm:$0xff] }
 0x1ed   : > { %3508 = vmatmul.msk.bf16.vlgmr.msrb.gmra.mxu2 %vm5014_vm3, %v5018_v59  ;;  %3511 = vmatmul.msk.bf16.vlgmr.msrb.gmra.mxu3 %vm5014_vm3, %v5018_v59  ;;  %v3418_v36 = vld [vmem:[%s5878_s5 + $0x370] sm:$0xf0]  ;;  %v3417_v41 = vor.u32 %v4185_v32, %v3416_v31  ;;  %v3173_v32 = vor.u32 %v4114_v25, %v3170_v26  ;;  %v4242_v25 = vld [vmem:[%s5880_s7 + $0x138] sm:$0xff] }
 0x1ee   : > { %3514 = vmatmul.msk.bf16.vlgmr.msra.gmra.mxu0 %vm5014_vm3, %v5018_v59  ;;  %3517 = vmatmul.msk.bf16.vlgmr.msra.gmra.mxu1 %vm5014_vm3, %v5018_v59  ;;  %v3421_v42 = vor.u32 %v4177_v35, %v3418_v36  ;;  %v3104_v35 = vld [vmem:[%s5878_s5 + $0xb8] sm:$0xf]  ;;  %v4205_v13 = vld [vmem:[%s5880_s7 + $0x10] sm:$0xff] }
 0x1ef   : > { %1453 = vmatpush.bf16.msra.mxu2 %v3209_v43  ;;  %1466 = vmatpush.bf16.msra.mxu3 %v3213_v44  ;;  %v3352_v43 = vld [vmem:[%s5878_s5 + $0x2b0] sm:$0xf]  ;;  %v4106_v36 = vld [vmem:[%s5878_s5 + $0xf4] sm:$0xf0] }
 0x1f0   : > { %1479 = vmatpush.bf16.msrb.mxu0 %v3217_v48  ;;  %1492 = vmatpush.bf16.msrb.mxu1 %v3221_v49  ;;  %v4169_v44 = vld [vmem:[%s5878_s5 + $0x2ec] sm:$0xf0]  ;;  %v4161_v48 = vld [vmem:[%s5878_s5 + $0x2b4] sm:$0xf]  ;;  %v4250_v26 = vld [vmem:[%s5880_s7 + $0x178] sm:$0xff] }
 0x1f1   : > { %v3354_v49 = vld [vmem:[%s5878_s5 + $0x2f0] sm:$0xf0]  ;;  %v3353_v54 = vor.u32 %v4169_v44, %v3352_v43  ;;  %v3105_v43 = vor.u32 %v4106_v36, %v3104_v35  ;;  %v3109_v44 = vor.u32 %v4098_v37, %v3106_v38  ;;  %v4255_v35 = vld [vmem:[%s5880_s7 + $0x1a0] sm:$0xff] }
 0x1f2   : > { %v3357_v55 = vor.u32 %v4161_v48, %v3354_v49  ;;  %v3040_v48 = vld [vmem:[%s5878_s5 + $0x38] sm:$0xf]  ;;  %v4213_v14 = vld [vmem:[%s5880_s7 + $0x50] sm:$0xff]  ;;  %v4263_v36 = vld [vmem:[%s5880_s7 + $0x1e0] sm:$0xff] }
 0x1f3   : > { %1454 = vmatpush.bf16.msra.mxu2 %v3145_v56  ;;  %1467 = vmatpush.bf16.msra.mxu3 %v3149_v57  ;;  %v3288_v56 = vld [vmem:[%s5878_s5 + $0x230] sm:$0xf]  ;;  %v4090_v49 = vld [vmem:[%s5878_s5 + $0x74] sm:$0xf0]  ;;  %v4239_v37 = vld [vmem:[%s5880_s7 + $0x120] sm:$0xff] }
 0x1f4   : > { %1480 = vmatpush.bf16.msrb.mxu0 %v3153_v61  ;;  %1493 = vmatpush.bf16.msrb.mxu1 %v3157_v62  ;;  %v4153_v57 = vld [vmem:[%s5878_s5 + $0x26c] sm:$0xf0]  ;;  %v4145_v61 = vld [vmem:[%s5878_s5 + $0x234] sm:$0xf]  ;;  %v4247_v38 = vld [vmem:[%s5880_s7 + $0x160] sm:$0xff] }
 0x1f5   : > { %v3290_v62 = vld [vmem:[%s5878_s5 + $0x270] sm:$0xf0]  ;;  %v3289_v3 = vor.u32 %v4153_v57, %v3288_v56  ;;  %v4226_v56 = vld [vmem:[%s5880_s7 + $0xb8] sm:$0xff] }
 0x1f6   : > { %v3293_v4 = vor.u32 %v4145_v61, %v3290_v62  ;;  %v4234_v57 = vld [vmem:[%s5880_s7 + $0xf8] sm:$0xff]  ;;  %v4225_v61 = vld [vmem:[%s5880_s7 + $0xb0] sm:$0xff] }
 0x1f7   : > { %1455 = vmatpush.bf16.msra.mxu2 %v3081_v6  ;;  %1468 = vmatpush.bf16.msra.mxu3 %v3085_v7  ;;  %v4137_v6 = vld [vmem:[%s5878_s5 + $0x1ec] sm:$0xf0]  ;;  %v3297_v7 = vor.u32 %v4154_v0, %v3296_v63 }
 0x1f8   : > { %1481 = vmatpush.bf16.msrb.mxu0 %v3089_v11  ;;  %1494 = vmatpush.bf16.msrb.mxu1 %v3093_v12  ;;  %v3232_v11 = vld [vmem:[%s5878_s5 + $0x1b8] sm:$0xf]  ;;  %v3225_v15 = vor.u32 %v4137_v6, %v3224_v5  ;;  %v4233_v62 = vld [vmem:[%s5880_s7 + $0xf0] sm:$0xff]  ;;  %v4207_v5 = vld [vmem:[%s5880_s7 + $0x20] sm:$0xff] }
 0x1f9   : > { %v4138_v12 = vld [vmem:[%s5878_s5 + $0x1f4] sm:$0xf0]  ;;  %v4209_v63 = vld [vmem:[%s5880_s7 + $0x30] sm:$0xff]  ;;  %v4215_v6 = vld [vmem:[%s5880_s7 + $0x60] sm:$0xff] }
 0x1fa   : > { %v3233_v19 = vor.u32 %v4138_v12, %v3232_v11  ;;  %v4217_v0 = vld [vmem:[%s5880_s7 + $0x70] sm:$0xff] }
 0x1fb   : > { %1456 = vmatpush.bf16.msra.mxu2 %v3017_v22  ;;  %1469 = vmatpush.bf16.msra.mxu3 %v3021_v23  ;;  %v3162_v22 = vld [vmem:[%s5878_s5 + $0x170] sm:$0xf0]  ;;  %v3168_v23 = vld [vmem:[%s5878_s5 + $0x138] sm:$0xf] }
 0x1fc   : > { %1482 = vmatpush.bf16.msrb.mxu0 %v3025_v27  ;;  %1495 = vmatpush.bf16.msrb.mxu1 %v3029_v28  ;;  %v3161_v27 = vor.u32 %v4121_v18, %v3160_v17  ;;  %v3165_v28 = vor.u32 %v4113_v21, %v3162_v22  ;;  %v3169_v31 = vor.u32 %v4122_v24, %v3168_v23  ;;  %v4221_v11 = vld [vmem:[%s5880_s7 + $0x90] sm:$0xff]  ;;  %v4204_v17 = vld [vmem:[%s5880_s7 + $0x8] sm:$0xff]  ;;  %v4258_v21 = vld [vmem:[%s5880_s7 + $0x1b8] sm:$0xff] }
 0x1fd   : > { %v4229_v12 = vld [vmem:[%s5880_s7 + $0xd0] sm:$0xff]  ;;  %v4212_v18 = vld [vmem:[%s5880_s7 + $0x48] sm:$0xff]  ;;  %v4266_v22 = vld [vmem:[%s5880_s7 + $0x1f8] sm:$0xff] }
 0x1fe   : > { %3520 = vmatmul.msk.bf16.vlgmr.msra.gmra.mxu2 %vm5014_vm3, %v5018_v59  ;;  %3523 = vmatmul.msk.bf16.vlgmr.msra.gmra.mxu3 %vm5014_vm3, %v5018_v59  ;;  %v4203_v23 = vld [vmem:[%s5880_s7] sm:$0xff] }
 0x1ff   : > { %1501 = vmatpush.bf16.msrb.mxu2 %v3481_v29  ;;  %1514 = vmatpush.bf16.msrb.mxu3 %v3485_v30  ;;  %v3096_v29 = vld [vmem:[%s5878_s5 + $0xb0] sm:$0xf]  ;;  %v4211_v24 = vld [vmem:[%s5880_s7 + $0x40] sm:$0xff] }
 0x200   : > { %1527 = vmatpush.bf16.msra.mxu0 %v3489_v33  ;;  %1540 = vmatpush.bf16.msra.mxu1 %v3493_v34  ;;  %v4105_v30 = vld [vmem:[%s5878_s5 + $0xec] sm:$0xf0]  ;;  %v4097_v33 = vld [vmem:[%s5878_s5 + $0xb4] sm:$0xf] }
 0x201   : > { %3526 = vmatmul.msk.bf16.vlgmr.msrb.gmra.mxu0 %vm5014_vm3, %v5018_v59  ;;  %3529 = vmatmul.msk.bf16.vlgmr.msrb.gmra.mxu1 %vm5014_vm3, %v5018_v59  ;;  %v3098_v34 = vld [vmem:[%s5878_s5 + $0xf0] sm:$0xf0]  ;;  %v3097_v39 = vor.u32 %v4105_v30, %v3096_v29 }
 0x202   : > { %v3101_v40 = vor.u32 %v4097_v33, %v3098_v34  ;;  %v4241_v29 = vld [vmem:[%s5880_s7 + $0x130] sm:$0xff]  ;;  %v4240_v33 = vld [vmem:[%s5880_s7 + $0x128] sm:$0xff] }
 0x203   : > { %1502 = vmatpush.bf16.msrb.mxu2 %v3417_v41  ;;  %1515 = vmatpush.bf16.msrb.mxu3 %v3421_v42  ;;  %v3032_v41 = vld [vmem:[%s5878_s5 + $0x30] sm:$0xf]  ;;  %v4248_v34 = vld [vmem:[%s5880_s7 + $0x168] sm:$0xff] }
 0x204   : > { %1528 = vmatpush.bf16.msra.mxu0 %v3425_v45  ;;  %1541 = vmatpush.bf16.msra.mxu1 %v3429_v47  ;;  %v4089_v42 = vld [vmem:[%s5878_s5 + $0x6c] sm:$0xf0]  ;;  %v4081_v45 = vld [vmem:[%s5878_s5 + $0x34] sm:$0xf] }
 0x205   : > { %v3034_v47 = vld [vmem:[%s5878_s5 + $0x70] sm:$0xf0]  ;;  %v3033_v52 = vor.u32 %v4089_v42, %v3032_v41  ;;  %v4238_v41 = vld [vmem:[%s5880_s7 + $0x118] sm:$0xff] }
 0x206   : > { %v3037_v53 = vor.u32 %v4081_v45, %v3034_v47  ;;  %v4249_v30 = vld [vmem:[%s5880_s7 + $0x170] sm:$0xff]  ;;  %v4246_v42 = vld [vmem:[%s5880_s7 + $0x158] sm:$0xff] }
 0x207   : > { %1503 = vmatpush.bf16.msrb.mxu2 %v3353_v54  ;;  %1516 = vmatpush.bf16.msrb.mxu3 %v3357_v55  ;;  %v3041_v54 = vor.u32 %v4090_v49, %v3040_v48  ;;  %v3045_v55 = vor.u32 %v4082_v50, %v3042_v51  ;;  %v4237_v45 = vld [vmem:[%s5880_s7 + $0x110] sm:$0xff]  ;;  %v4252_v48 = vld [vmem:[%s5880_s7 + $0x188] sm:$0xff] }
 0x208   : > { %1529 = vmatpush.bf16.msra.mxu0 %v3361_v46  ;;  %1542 = vmatpush.bf16.msra.mxu1 %v3365_v60  ;;  %v4210_v46 = vld [vmem:[%s5880_s7 + $0x38] sm:$0xff]  ;;  %v4245_v47 = vld [vmem:[%s5880_s7 + $0x150] sm:$0xff]  ;;  %v4260_v49 = vld [vmem:[%s5880_s7 + $0x1c8] sm:$0xff] }
 0x209   : > { %v4218_v60 = vld [vmem:[%s5880_s7 + $0x78] sm:$0xff]  ;;  %v4236_v50 = vld [vmem:[%s5880_s7 + $0x108] sm:$0xff] }
 0x20a   : > { %v4244_v51 = vld [vmem:[%s5880_s7 + $0x148] sm:$0xff] }
 0x20b   : > { %1504 = vmatpush.bf16.msrb.mxu2 %v3289_v3  ;;  %1517 = vmatpush.bf16.msrb.mxu3 %v3293_v4  ;;  %v4223_v3 = vld [vmem:[%s5880_s7 + $0xa0] sm:$0xff] }
 0x20c   : > { %1530 = vmatpush.bf16.msra.mxu0 %v3297_v7  ;;  %1543 = vmatpush.bf16.msra.mxu1 %v3301_v8  ;;  %v4231_v4 = vld [vmem:[%s5880_s7 + $0xe0] sm:$0xff]  ;;  %v4222_v7 = vld [vmem:[%s5880_s7 + $0x98] sm:$0xff] }
 0x20d   : > { %v4230_v8 = vld [vmem:[%s5880_s7 + $0xd8] sm:$0xff] }
 0x20f   : > { %1505 = vmatpush.bf16.msrb.mxu2 %v3225_v15  ;;  %1518 = vmatpush.bf16.msrb.mxu3 %v3229_v16  ;;  %v4220_v15 = vld [vmem:[%s5880_s7 + $0x88] sm:$0xff] }
 0x210   : > { %1531 = vmatpush.bf16.msra.mxu0 %v3233_v19  ;;  %1544 = vmatpush.bf16.msra.mxu1 %v3237_v20  ;;  %v4228_v16 = vld [vmem:[%s5880_s7 + $0xc8] sm:$0xff]  ;;  %v4219_v19 = vld [vmem:[%s5880_s7 + $0x80] sm:$0xff] }
 0x211   : > { %v4227_v20 = vld [vmem:[%s5880_s7 + $0xc0] sm:$0xff] }
 0x213   : > { %1506 = vmatpush.bf16.msrb.mxu2 %v3161_v27  ;;  %1519 = vmatpush.bf16.msrb.mxu3 %v3165_v28  ;;  %v4257_v27 = vld [vmem:[%s5880_s7 + $0x1b0] sm:$0xff] }
 0x214   : > { %1532 = vmatpush.bf16.msra.mxu0 %v3169_v31  ;;  %1545 = vmatpush.bf16.msra.mxu1 %v3173_v32  ;;  %v4265_v28 = vld [vmem:[%s5880_s7 + $0x1f0] sm:$0xff]  ;;  %v4256_v31 = vld [vmem:[%s5880_s7 + $0x1a8] sm:$0xff] }
 0x215   : > { %v4264_v32 = vld [vmem:[%s5880_s7 + $0x1e8] sm:$0xff] }
 0x217   : > { %1507 = vmatpush.bf16.msrb.mxu2 %v3097_v39  ;;  %1520 = vmatpush.bf16.msrb.mxu3 %v3101_v40  ;;  %v4254_v39 = vld [vmem:[%s5880_s7 + $0x198] sm:$0xff] }
 0x218   : > { %1533 = vmatpush.bf16.msra.mxu0 %v3105_v43  ;;  %1546 = vmatpush.bf16.msra.mxu1 %v3109_v44  ;;  %v4262_v40 = vld [vmem:[%s5880_s7 + $0x1d8] sm:$0xff]  ;;  %v4253_v43 = vld [vmem:[%s5880_s7 + $0x190] sm:$0xff] }
 0x219   : > { %v4261_v44 = vld [vmem:[%s5880_s7 + $0x1d0] sm:$0xff] }
 0x21b   : > { %1508 = vmatpush.bf16.msrb.mxu2 %v3033_v52  ;;  %1521 = vmatpush.bf16.msrb.mxu3 %v3037_v53  ;;  %v4251_v52 = vld [vmem:[%s5880_s7 + $0x180] sm:$0xff] }
 0x21c   : > { %1534 = vmatpush.bf16.msra.mxu0 %v3041_v54  ;;  %1547 = vmatpush.bf16.msra.mxu1 %v3045_v55  ;;  %v4259_v53 = vld [vmem:[%s5880_s7 + $0x1c0] sm:$0xff] }
 0x21d   : > { %v4235_v54 = vld [vmem:[%s5880_s7 + $0x100] sm:$0xff] }
 0x21e   : > { %3532 = vmatmul.msk.bf16.vlgmr.msrb.gmra.mxu2 %vm5014_vm3, %v5018_v59  ;;  %3535 = vmatmul.msk.bf16.vlgmr.msrb.gmra.mxu3 %vm5014_vm3, %v5018_v59  ;;  %v4243_v55 = vld [vmem:[%s5880_s7 + $0x140] sm:$0xff] }
 0x21f   : > { %3538 = vmatmul.msk.bf16.vlgmr.msra.gmra.mxu0 %vm5014_vm3, %v5018_v59  ;;  %3541 = vmatmul.msk.bf16.vlgmr.msra.gmra.mxu1 %vm5014_vm3, %v5018_v59  ;;  %v4208_v59 = vld [vmem:[%s5880_s7 + $0x28] sm:$0xff] }
 0x220   : > { %2636 = vmatpush.bf16.msrb.mxu0 %v4226_v56  ;;  %2649 = vmatpush.bf16.msrb.mxu1 %v4234_v57  ;;  %v5623_v56 = vld [vmem:[%s5879_s6] sm:$0xff] }
 0x221   : > { %2610 = vmatpush.bf16.msra.mxu2 %v4210_v46  ;;  %2623 = vmatpush.bf16.msra.mxu3 %v4218_v60  ;;  %v1315_v57 = vperm.slane %v5623_v56, 2  ;;  %v1316_v46 = vperm.slane %v5623_v56, 3 }
 0x224   : > { %2637 = vmatpush.bf16.msrb.mxu0 %v4225_v61  ;;  %2650 = vmatpush.bf16.msrb.mxu1 %v4233_v62 }
 0x225   : > { %2611 = vmatpush.bf16.msra.mxu2 %v4209_v63  ;;  %2624 = vmatpush.bf16.msra.mxu3 %v4217_v0  ;;  %v1313_v0 = vperm.slane %v5623_v56, 0 }
 0x228   : > { %2638 = vmatpush.bf16.msrb.mxu0 %v4224_v1  ;;  %2651 = vmatpush.bf16.msrb.mxu1 %v4232_v58  ;;  %v1314_v1 = vperm.slane %v5623_v56, 1 }
 0x229   : > { %2612 = vmatpush.bf16.msra.mxu2 %v4208_v59  ;;  %2625 = vmatpush.bf16.msra.mxu3 %v4216_v2  ;;  %v4290_v2 = vld [vmem:[%s5880_s7 + $0x2b8] sm:$0xff] }
 0x22c   : > { %2639 = vmatpush.bf16.msrb.mxu0 %v4223_v3  ;;  %2652 = vmatpush.bf16.msrb.mxu1 %v4231_v4  ;;  %v4298_v3 = vld [vmem:[%s5880_s7 + $0x2f8] sm:$0xff] }
 0x22d   : > { %2613 = vmatpush.bf16.msra.mxu2 %v4207_v5  ;;  %2626 = vmatpush.bf16.msra.mxu3 %v4215_v6 }
 0x230   : > { %2640 = vmatpush.bf16.msrb.mxu0 %v4222_v7  ;;  %2653 = vmatpush.bf16.msrb.mxu1 %v4230_v8 }
 0x231   : > { %2614 = vmatpush.bf16.msra.mxu2 %v4206_v9  ;;  %2627 = vmatpush.bf16.msra.mxu3 %v4214_v10 }
 0x234   : > { %2641 = vmatpush.bf16.msrb.mxu0 %v4221_v11  ;;  %2654 = vmatpush.bf16.msrb.mxu1 %v4229_v12 }
 0x235   : > { %2615 = vmatpush.bf16.msra.mxu2 %v4205_v13  ;;  %2628 = vmatpush.bf16.msra.mxu3 %v4213_v14  ;;  %v4289_v14 = vld [vmem:[%s5880_s7 + $0x2b0] sm:$0xff] }
 0x238   : > { %2642 = vmatpush.bf16.msrb.mxu0 %v4220_v15  ;;  %2655 = vmatpush.bf16.msrb.mxu1 %v4228_v16  ;;  %v4297_v15 = vld [vmem:[%s5880_s7 + $0x2f0] sm:$0xff] }
 0x239   : > { %2616 = vmatpush.bf16.msra.mxu2 %v4204_v17  ;;  %2629 = vmatpush.bf16.msra.mxu3 %v4212_v18  ;;  %v4274_v18 = vld [vmem:[%s5880_s7 + $0x238] sm:$0xff] }
 0x23c   : > { %2643 = vmatpush.bf16.msrb.mxu0 %v4219_v19  ;;  %2656 = vmatpush.bf16.msrb.mxu1 %v4227_v20  ;;  %v4282_v19 = vld [vmem:[%s5880_s7 + $0x278] sm:$0xff]  ;;  %v4288_v20 = vld [vmem:[%s5880_s7 + $0x2a8] sm:$0xff] }
 0x23d   : > { %2617 = vmatpush.bf16.msra.mxu2 %v4203_v23  ;;  %2630 = vmatpush.bf16.msra.mxu3 %v4211_v24  ;;  %v1319_v24 = vperm.slane %v5623_v56, 6 }
 0x240   : > { %2688 = vmatpush.bf16.msra.mxu0 %v4258_v21  ;;  %2701 = vmatpush.bf16.msra.mxu1 %v4266_v22  ;;  %v4296_v21 = vld [vmem:[%s5880_s7 + $0x2e8] sm:$0xff] }
 0x241   : > { %2662 = vmatpush.bf16.msrb.mxu2 %v4242_v25  ;;  %2675 = vmatpush.bf16.msrb.mxu3 %v4250_v26  ;;  %v1320_v25 = vperm.slane %v5623_v56, 7  ;;  %v4273_v26 = vld [vmem:[%s5880_s7 + $0x230] sm:$0xff] }
 0x244   : > { %2689 = vmatpush.bf16.msra.mxu0 %v4257_v27  ;;  %2702 = vmatpush.bf16.msra.mxu1 %v4265_v28  ;;  %v4281_v27 = vld [vmem:[%s5880_s7 + $0x270] sm:$0xff] }
 0x245   : > { %2663 = vmatpush.bf16.msrb.mxu2 %v4241_v29  ;;  %2676 = vmatpush.bf16.msrb.mxu3 %v4249_v30  ;;  %v4287_v30 = vld [vmem:[%s5880_s7 + $0x2a0] sm:$0xff] }
 0x248   : > { %2690 = vmatpush.bf16.msra.mxu0 %v4256_v31  ;;  %2703 = vmatpush.bf16.msra.mxu1 %v4264_v32  ;;  %v4295_v31 = vld [vmem:[%s5880_s7 + $0x2e0] sm:$0xff] }
 0x249   : > { %2664 = vmatpush.bf16.msrb.mxu2 %v4240_v33  ;;  %2677 = vmatpush.bf16.msrb.mxu3 %v4248_v34  ;;  %v4272_v34 = vld [vmem:[%s5880_s7 + $0x228] sm:$0xff] }
 0x24c   : > { %2691 = vmatpush.bf16.msra.mxu0 %v4255_v35  ;;  %2704 = vmatpush.bf16.msra.mxu1 %v4263_v36  ;;  %v4280_v35 = vld [vmem:[%s5880_s7 + $0x268] sm:$0xff]  ;;  %v1317_v36 = vperm.slane %v5623_v56, 4 }
 0x24d   : > { %2665 = vmatpush.bf16.msrb.mxu2 %v4239_v37  ;;  %2678 = vmatpush.bf16.msrb.mxu3 %v4247_v38  ;;  %v1318_v37 = vperm.slane %v5623_v56, 5  ;;  %v4293_v56 = vld [vmem:[%s5880_s7 + $0x2d0] sm:$0xff] }
 0x250   : > { %2692 = vmatpush.bf16.msra.mxu0 %v4254_v39  ;;  %2705 = vmatpush.bf16.msra.mxu1 %v4262_v40  ;;  %v4286_v40 = vld [vmem:[%s5880_s7 + $0x298] sm:$0xff] }
 0x251   : > { %2666 = vmatpush.bf16.msrb.mxu2 %v4238_v41  ;;  %2679 = vmatpush.bf16.msrb.mxu3 %v4246_v42  ;;  %v4294_v41 = vld [vmem:[%s5880_s7 + $0x2d8] sm:$0xff] }
 0x254   : > { %2693 = vmatpush.bf16.msra.mxu0 %v4253_v43  ;;  %2706 = vmatpush.bf16.msra.mxu1 %v4261_v44 }
 0x255   : > { %2667 = vmatpush.bf16.msrb.mxu2 %v4237_v45  ;;  %2680 = vmatpush.bf16.msrb.mxu3 %v4245_v47 }
 0x258   : > { %2694 = vmatpush.bf16.msra.mxu0 %v4252_v48  ;;  %2707 = vmatpush.bf16.msra.mxu1 %v4260_v49  ;;  %v4271_v49 = vld [vmem:[%s5880_s7 + $0x220] sm:$0xff] }
 0x259   : > { %2668 = vmatpush.bf16.msrb.mxu2 %v4236_v50  ;;  %2681 = vmatpush.bf16.msrb.mxu3 %v4244_v51  ;;  %v4279_v50 = vld [vmem:[%s5880_s7 + $0x260] sm:$0xff] }
 0x25b   : > { %v1380_v60 = vpop.f32.mrf.mxu0  ;;  %v1393_v61 = vpop.f32.mrf.mxu1 }
 0x25c   : > { %2695 = vmatpush.bf16.msra.mxu0 %v4251_v52  ;;  %2708 = vmatpush.bf16.msra.mxu1 %v4259_v53  ;;  %v1381_v62 = vadd.f32 %v1380_v60, %v1315_v57  ;;  %v1394_v63 = vadd.f32 %v1393_v61, %v1316_v46  ;;  %v4270_v60 = vld [vmem:[%s5880_s7 + $0x218] sm:$0xff] }
 0x25d   : > { %2669 = vmatpush.bf16.msrb.mxu2 %v4235_v54  ;;  %2682 = vmatpush.bf16.msrb.mxu3 %v4243_v55  ;;  %v4285_v55 = vld [vmem:[%s5880_s7 + $0x290] sm:$0xff]  ;;  %v4278_v61 = vld [vmem:[%s5880_s7 + $0x258] sm:$0xff] }
 0x25e   : > { %v1555_v58 = vmax.f32 %v1381_v62, 0.0  ;;  %v1556_v59 = vmax.f32 %v1394_v63, 0.0  ;;  %v4284_v62 = vld [vmem:[%s5880_s7 + $0x288] sm:$0xff] }
 0x25f   : > { %v4292_v63 = vld [vmem:[%s5880_s7 + $0x2c8] sm:$0xff] }
 0x260   : > { %v1571_v4 = vpack.c.bf16 %v1555_v58, %v1555_v58  ;;  %v1572_v5 = vpack.c.bf16 %v1556_v59, %v1556_v59  ;;  %v1354_v6 = vpop.f32.mrf.mxu2  ;;  %v1367_v7 = vpop.f32.mrf.mxu3  ;;  %v4269_v59 = vld [vmem:[%s5880_s7 + $0x210] sm:$0xff] }
 0x261   : > { %v1355_v8 = vadd.f32 %v1354_v6, %v1313_v0  ;;  %v1368_v9 = vadd.f32 %v1367_v7, %v1314_v1  ;;  %v5708_v0 = vld [vmem:[%s5879_s6 + $0x8] sm:$0xff]  ;;  %v4291_v6 = vld [vmem:[%s5880_s7 + $0x2c0] sm:$0xff]  ;;  %v4322_v7 = vld [vmem:[%s5880_s7 + $0x3b8] sm:$0xff] }
 0x262   : > { %2644 = vmatmul.bf16.vlgmr.msrb.gmra.mxu0 %v1571_v4  ;;  %2657 = vmatmul.bf16.vlgmr.msrb.gmra.mxu1 %v1572_v5  ;;  %v1324_v4 = vperm.slane %v5708_v0, 3  ;;  %v4283_v5 = vld [vmem:[%s5880_s7 + $0x280] sm:$0xff] }
 0x263   : > { %v1553_v10 = vmax.f32 %v1355_v8, 0.0  ;;  %v1554_v11 = vmax.f32 %v1368_v9, 0.0  ;;  %2740 = vmatpush.bf16.msrb.mxu0 %v4290_v2  ;;  %2753 = vmatpush.bf16.msrb.mxu1 %v4298_v3  ;;  %v1382_v12 = vpop.f32.mrf.mxu0  ;;  %v1395_v13 = vpop.f32.mrf.mxu1  ;;  %v4277_v2 = vld [vmem:[%s5880_s7 + $0x250] sm:$0xff]  ;;  %v1323_v3 = vperm.slane %v5708_v0, 2  ;;  %v4330_v8 = vld [vmem:[%s5880_s7 + $0x3f8] sm:$0xff] }
 0x264   : > { %v4276_v12 = vld [vmem:[%s5880_s7 + $0x248] sm:$0xff] }
 0x265   : > { %v1569_v16 = vpack.c.bf16 %v1553_v10, %v1553_v10  ;;  %v1570_v17 = vpack.c.bf16 %v1554_v11, %v1554_v11  ;;  %v4268_v11 = vld [vmem:[%s5880_s7 + $0x208] sm:$0xff] }
 0x267   : > { %2741 = vmatpush.bf16.msrb.mxu0 %v4289_v14  ;;  %2754 = vmatpush.bf16.msrb.mxu1 %v4297_v15  ;;  %v1321_v15 = vperm.slane %v5708_v0, 0 }
 0x268   : > { %2618 = vmatmul.bf16.vlgmr.msra.gmra.mxu2 %v1569_v16  ;;  %2631 = vmatmul.bf16.vlgmr.msra.gmra.mxu3 %v1570_v17  ;;  %v1356_v22 = vpop.f32.mrf.mxu2  ;;  %v1369_v23 = vpop.f32.mrf.mxu3  ;;  %v1322_v16 = vperm.slane %v5708_v0, 1 }
 0x269   : > { %2714 = vmatpush.bf16.msra.mxu2 %v4274_v18  ;;  %2727 = vmatpush.bf16.msra.mxu3 %v4282_v19  ;;  %v4321_v19 = vld [vmem:[%s5880_s7 + $0x3b0] sm:$0xff] }
 0x26b   : > { %2742 = vmatpush.bf16.msrb.mxu0 %v4288_v20  ;;  %2755 = vmatpush.bf16.msrb.mxu1 %v4296_v21  ;;  %v1432_v28 = vpop.f32.mrf.mxu0  ;;  %v1445_v29 = vpop.f32.mrf.mxu1  ;;  %v4329_v20 = vld [vmem:[%s5880_s7 + $0x3f0] sm:$0xff] }
 0x26c   : > { %v1433_v32 = vadd.f32 %v1432_v28, %v1319_v24  ;;  %v1446_v33 = vadd.f32 %v1445_v29, %v1320_v25  ;;  %v4267_v25 = vld [vmem:[%s5880_s7 + $0x200] sm:$0xff]  ;;  %v4306_v29 = vld [vmem:[%s5880_s7 + $0x338] sm:$0xff] }
 0x26d   : > { %2715 = vmatpush.bf16.msra.mxu2 %v4273_v26  ;;  %2728 = vmatpush.bf16.msra.mxu3 %v4281_v27  ;;  %v4275_v26 = vld [vmem:[%s5880_s7 + $0x240] sm:$0xff] }
 0x26e   : > { %v1559_v38 = vmax.f32 %v1433_v32, 0.0  ;;  %v1560_v39 = vmax.f32 %v1446_v33, 0.0 }
 0x26f   : > { %2743 = vmatpush.bf16.msrb.mxu0 %v4287_v30  ;;  %2756 = vmatpush.bf16.msrb.mxu1 %v4295_v31  ;;  %v4314_v30 = vld [vmem:[%s5880_s7 + $0x378] sm:$0xff] }
 0x270   : > { %v1575_v42 = vpack.c.bf16 %v1559_v38, %v1559_v38  ;;  %v1576_v43 = vpack.c.bf16 %v1560_v39, %v1560_v39  ;;  %v1406_v44 = vpop.f32.mrf.mxu2  ;;  %v1419_v45 = vpop.f32.mrf.mxu3  ;;  %v4305_v39 = vld [vmem:[%s5880_s7 + $0x330] sm:$0xff] }
 0x271   : > { %2716 = vmatpush.bf16.msra.mxu2 %v4272_v34  ;;  %2729 = vmatpush.bf16.msra.mxu3 %v4280_v35  ;;  %v1407_v47 = vadd.f32 %v1406_v44, %v1317_v36  ;;  %v1420_v48 = vadd.f32 %v1419_v45, %v1318_v37  ;;  %v4320_v35 = vld [vmem:[%s5880_s7 + $0x3a8] sm:$0xff] }
 0x272   : > { %2696 = vmatmul.bf16.vlgmr.msra.gmra.mxu0 %v1575_v42  ;;  %2709 = vmatmul.bf16.vlgmr.msra.gmra.mxu1 %v1576_v43  ;;  %v4328_v36 = vld [vmem:[%s5880_s7 + $0x3e8] sm:$0xff]  ;;  %v4327_v42 = vld [vmem:[%s5880_s7 + $0x3e0] sm:$0xff] }
 0x273   : > { %v1557_v51 = vmax.f32 %v1407_v47, 0.0  ;;  %v1558_v52 = vmax.f32 %v1420_v48, 0.0  ;;  %2744 = vmatpush.bf16.msrb.mxu0 %v4286_v40  ;;  %2757 = vmatpush.bf16.msrb.mxu1 %v4294_v41  ;;  %v1434_v53 = vpop.f32.mrf.mxu0  ;;  %v1447_v54 = vpop.f32.mrf.mxu1  ;;  %v4313_v40 = vld [vmem:[%s5880_s7 + $0x370] sm:$0xff]  ;;  %v4319_v41 = vld [vmem:[%s5880_s7 + $0x3a0] sm:$0xff]  ;;  %v4304_v45 = vld [vmem:[%s5880_s7 + $0x328] sm:$0xff] }
 0x274   : > { %v4312_v47 = vld [vmem:[%s5880_s7 + $0x368] sm:$0xff]  ;;  %v4318_v48 = vld [vmem:[%s5880_s7 + $0x398] sm:$0xff]  ;;  %v4325_v53 = vld [vmem:[%s5880_s7 + $0x3d0] sm:$0xff] }
 0x275   : > { %v1573_v57 = vpack.c.bf16 %v1557_v51, %v1557_v51  ;;  %v1574_v46 = vpack.c.bf16 %v1558_v52, %v1558_v52  ;;  %2717 = vmatpush.bf16.msra.mxu2 %v4271_v49  ;;  %2730 = vmatpush.bf16.msra.mxu3 %v4279_v50  ;;  %v4326_v49 = vld [vmem:[%s5880_s7 + $0x3d8] sm:$0xff]  ;;  %v4303_v50 = vld [vmem:[%s5880_s7 + $0x320] sm:$0xff]  ;;  %v4317_v52 = vld [vmem:[%s5880_s7 + $0x390] sm:$0xff] }
 0x276   : > { %v4311_v51 = vld [vmem:[%s5880_s7 + $0x360] sm:$0xff]  ;;  %v4302_v54 = vld [vmem:[%s5880_s7 + $0x318] sm:$0xff] }
 0x277   : > { %2745 = vmatpush.bf16.msrb.mxu0 %v4285_v55  ;;  %2758 = vmatpush.bf16.msrb.mxu1 %v4293_v56  ;;  %v4310_v55 = vld [vmem:[%s5880_s7 + $0x358] sm:$0xff]  ;;  %v4316_v56 = vld [vmem:[%s5880_s7 + $0x388] sm:$0xff] }
 0x278   : > { %2670 = vmatmul.bf16.vlgmr.msrb.gmra.mxu2 %v1573_v57  ;;  %2683 = vmatmul.bf16.vlgmr.msrb.gmra.mxu3 %v1574_v46  ;;  %v1408_v1 = vpop.f32.mrf.mxu2  ;;  %v1421_v58 = vpop.f32.mrf.mxu3  ;;  %v4324_v57 = vld [vmem:[%s5880_s7 + $0x3c8] sm:$0xff]  ;;  %v1327_v46 = vperm.slane %v5708_v0, 6 }
 0x279   : > { %2718 = vmatpush.bf16.msra.mxu2 %v4270_v60  ;;  %2731 = vmatpush.bf16.msra.mxu3 %v4278_v61  ;;  %v1328_v60 = vperm.slane %v5708_v0, 7  ;;  %v4301_v61 = vld [vmem:[%s5880_s7 + $0x310] sm:$0xff]  ;;  %v4323_v1 = vld [vmem:[%s5880_s7 + $0x3c0] sm:$0xff] }
 0x27b   : > { %2746 = vmatpush.bf16.msrb.mxu0 %v4284_v62  ;;  %2759 = vmatpush.bf16.msrb.mxu1 %v4292_v63  ;;  %v4309_v62 = vld [vmem:[%s5880_s7 + $0x350] sm:$0xff]  ;;  %v4315_v63 = vld [vmem:[%s5880_s7 + $0x380] sm:$0xff] }
 0x27d   : > { %2719 = vmatpush.bf16.msra.mxu2 %v4269_v59  ;;  %2732 = vmatpush.bf16.msra.mxu3 %v4277_v2 }
 0x27e   : > { %v1484_v9 = vpop.f32.mrf.mxu0  ;;  %v1497_v10 = vpop.f32.mrf.mxu1 }
 0x27f   : > { %v1485_v13 = vadd.f32 %v1484_v9, %v1323_v3  ;;  %v1498_v14 = vadd.f32 %v1497_v10, %v1324_v4  ;;  %2747 = vmatpush.bf16.msrb.mxu0 %v4283_v5  ;;  %2760 = vmatpush.bf16.msrb.mxu1 %v4291_v6  ;;  %v4300_v4 = vld [vmem:[%s5880_s7 + $0x308] sm:$0xff]  ;;  %v1325_v6 = vperm.slane %v5708_v0, 4 }
 0x280   : > { %v4308_v5 = vld [vmem:[%s5880_s7 + $0x348] sm:$0xff] }
 0x281   : > { %v1563_v17 = vmax.f32 %v1485_v13, 0.0  ;;  %v1564_v18 = vmax.f32 %v1498_v14, 0.0  ;;  %2720 = vmatpush.bf16.msra.mxu2 %v4268_v11  ;;  %2733 = vmatpush.bf16.msra.mxu3 %v4276_v12  ;;  %v1458_v23 = vpop.f32.mrf.mxu2  ;;  %v1471_v24 = vpop.f32.mrf.mxu3  ;;  %v4299_v14 = vld [vmem:[%s5880_s7 + $0x300] sm:$0xff] }
 0x282   : > { %v1459_v27 = vadd.f32 %v1458_v23, %v1321_v15  ;;  %v1472_v28 = vadd.f32 %v1471_v24, %v1322_v16  ;;  %v4307_v15 = vld [vmem:[%s5880_s7 + $0x340] sm:$0xff] }
 0x283   : > { %2792 = vmatpush.bf16.msra.mxu0 %v4322_v7  ;;  %2805 = vmatpush.bf16.msra.mxu1 %v4330_v8  ;;  %v1579_v21 = vpack.c.bf16 %v1563_v17, %v1563_v17  ;;  %v1580_v22 = vpack.c.bf16 %v1564_v18, %v1564_v18  ;;  %v1326_v7 = vperm.slane %v5708_v0, 5 }
 0x284   : > { %v1561_v31 = vmax.f32 %v1459_v27, 0.0  ;;  %v1562_v32 = vmax.f32 %v1472_v28, 0.0 }
 0x285   : > { %2748 = vmatmul.bf16.vlgmr.msrb.gmra.mxu0 %v1579_v21  ;;  %2761 = vmatmul.bf16.vlgmr.msrb.gmra.mxu1 %v1580_v22 }
 0x286   : > { %v1486_v33 = vpop.f32.mrf.mxu0  ;;  %v1499_v34 = vpop.f32.mrf.mxu1  ;;  %2721 = vmatpush.bf16.msra.mxu2 %v4267_v25  ;;  %2734 = vmatpush.bf16.msra.mxu3 %v4275_v26  ;;  %v1577_v37 = vpack.c.bf16 %v1561_v31, %v1561_v31  ;;  %v1578_v38 = vpack.c.bf16 %v1562_v32, %v1562_v32 }
 0x287   : > { %2793 = vmatpush.bf16.msra.mxu0 %v4321_v19  ;;  %2806 = vmatpush.bf16.msra.mxu1 %v4329_v20 }
 0x289   : > { %2722 = vmatmul.bf16.vlgmr.msra.gmra.mxu2 %v1577_v37  ;;  %2735 = vmatmul.bf16.vlgmr.msra.gmra.mxu3 %v1578_v38  ;;  %v1460_v43 = vpop.f32.mrf.mxu2  ;;  %v1473_v44 = vpop.f32.mrf.mxu3 }
 0x28a   : > { %2766 = vmatpush.bf16.msrb.mxu2 %v4306_v29  ;;  %2779 = vmatpush.bf16.msrb.mxu3 %v4314_v30 }
 0x28b   : > { %2794 = vmatpush.bf16.msra.mxu0 %v4320_v35  ;;  %2807 = vmatpush.bf16.msra.mxu1 %v4328_v36 }
 0x28e   : > { %2767 = vmatpush.bf16.msrb.mxu2 %v4305_v39  ;;  %2780 = vmatpush.bf16.msrb.mxu3 %v4313_v40  ;;  %v1841_v39 = vld [vmem:[%s5881_s8] sm:$0x1] }
 0x28f   : > { %2795 = vmatpush.bf16.msra.mxu0 %v4319_v41  ;;  %2808 = vmatpush.bf16.msra.mxu1 %v4327_v42 }
 0x292   : > { %2768 = vmatpush.bf16.msrb.mxu2 %v4304_v45  ;;  %2781 = vmatpush.bf16.msrb.mxu3 %v4312_v47 }
 0x293   : > { %2796 = vmatpush.bf16.msra.mxu0 %v4318_v48  ;;  %2809 = vmatpush.bf16.msra.mxu1 %v4326_v49 }
 0x296   : > { %2769 = vmatpush.bf16.msrb.mxu2 %v4303_v50  ;;  %2782 = vmatpush.bf16.msrb.mxu3 %v4311_v51 }
 0x297   : > { %2797 = vmatpush.bf16.msra.mxu0 %v4317_v52  ;;  %2810 = vmatpush.bf16.msra.mxu1 %v4325_v53 }
 0x29a   : > { %2770 = vmatpush.bf16.msrb.mxu2 %v4302_v54  ;;  %2783 = vmatpush.bf16.msrb.mxu3 %v4310_v55 }
 0x29b   : > { %2798 = vmatpush.bf16.msra.mxu0 %v4316_v56  ;;  %2811 = vmatpush.bf16.msra.mxu1 %v4324_v57 }
 0x29c   : > { %v1536_v58 = vpop.f32.mrf.mxu0  ;;  %v1549_v59 = vpop.f32.mrf.mxu1 }
 0x29d   : > { %v1537_v2 = vadd.f32 %v1536_v58, %v1327_v46  ;;  %v1550_v3 = vadd.f32 %v1549_v59, %v1328_v60 }
 0x29e   : > { %2771 = vmatpush.bf16.msrb.mxu2 %v4301_v61  ;;  %2784 = vmatpush.bf16.msrb.mxu3 %v4309_v62 }
 0x29f   : > { %v1567_v8 = vmax.f32 %v1537_v2, 0.0  ;;  %v1568_v9 = vmax.f32 %v1550_v3, 0.0  ;;  %2799 = vmatpush.bf16.msra.mxu0 %v4315_v63  ;;  %2812 = vmatpush.bf16.msra.mxu1 %v4323_v1  ;;  %v2818_v2 = vlaneseq }
 0x2a1   : > { %v1583_v10 = vpack.c.bf16 %v1567_v8, %v1567_v8  ;;  %v1584_v11 = vpack.c.bf16 %v1568_v9, %v1568_v9  ;;  %v1510_v12 = vpop.f32.mrf.mxu2  ;;  %v1523_v13 = vpop.f32.mrf.mxu3 }
 0x2a2   : > { %2772 = vmatpush.bf16.msrb.mxu2 %v4300_v4  ;;  %2785 = vmatpush.bf16.msrb.mxu3 %v4308_v5  ;;  %v1511_v16 = vadd.f32 %v1510_v12, %v1325_v6  ;;  %v1524_v0 = vadd.f32 %v1523_v13, %v1326_v7  ;;  %v2819_v7 = vand.u32 127, %v2818_v2 }
 0x2a3   : > { %2800 = vmatmul.bf16.vlgmr.msra.gmra.mxu0 %v1583_v10  ;;  %2813 = vmatmul.bf16.vlgmr.msra.gmra.mxu1 %v1584_v11 }
 0x2a4   : > { %v1565_v17 = vmax.f32 %v1511_v16, 0.0  ;;  %v1566_v18 = vmax.f32 %v1524_v0, 0.0  ;;  %v1538_v19 = vpop.f32.mrf.mxu0  ;;  %v1551_v20 = vpop.f32.mrf.mxu1  ;;  %vm2820_vm4 = vcmp.lt.s32.totalorder %v2819_v7, 11 }
 0x2a6   : > { %2773 = vmatpush.bf16.msrb.mxu2 %v4299_v14  ;;  %2786 = vmatpush.bf16.msrb.mxu3 %v4307_v15  ;;  %v1581_v21 = vpack.c.bf16 %v1565_v17, %v1565_v17  ;;  %v1582_v22 = vpack.c.bf16 %v1566_v18, %v1566_v18 }
 0x2a9   : > { %2774 = vmatmul.bf16.vlgmr.msrb.gmra.mxu2 %v1581_v21  ;;  %2787 = vmatmul.bf16.vlgmr.msrb.gmra.mxu3 %v1582_v22  ;;  %v1512_v23 = vpop.f32.mrf.mxu2  ;;  %v1525_v24 = vpop.f32.mrf.mxu3 }
 0x2df   : > { %v2645_v25 = vpop.f32.mrf.mxu0  ;;  %v2658_v26 = vpop.f32.mrf.mxu1 }
 0x2e7   : > { %v2647_v27 = vpop.f32.mrf.mxu0  ;;  %v2660_v28 = vpop.f32.mrf.mxu1 }
 0x2eb   : > { %v2619_v29 = vpop.f32.mrf.mxu2  ;;  %v2632_v30 = vpop.f32.mrf.mxu3 }
 0x2ec   : > { %v2620_v40 = vadd.f32 %v2619_v29, %v1841_v39 }
 0x2ee   : > { %v2633_v45 = vadd.f32 %v2632_v30, %v2620_v40 }
 0x2ef   : > { %v2697_v31 = vpop.f32.mrf.mxu0  ;;  %v2710_v32 = vpop.f32.mrf.mxu1 }
 0x2f0   : > { %v2646_v47 = vadd.f32 %v2645_v25, %v2633_v45 }
 0x2f2   : > { %v2659_v50 = vadd.f32 %v2658_v26, %v2646_v47 }
 0x2f3   : > { %v2621_v33 = vpop.f32.mrf.mxu2  ;;  %v2634_v34 = vpop.f32.mrf.mxu3 }
 0x2f7   : > { %v2699_v35 = vpop.f32.mrf.mxu0  ;;  %v2712_v36 = vpop.f32.mrf.mxu1 }
 0x2fb   : > { %v2671_v37 = vpop.f32.mrf.mxu2  ;;  %v2684_v38 = vpop.f32.mrf.mxu3 }
 0x2fc   : > { %v2672_v53 = vadd.f32 %v2671_v37, %v2659_v50 }
 0x2fe   : > { %v2685_v54 = vadd.f32 %v2684_v38, %v2672_v53 }
 0x300   : > { %v2698_v57 = vadd.f32 %v2697_v31, %v2685_v54 }
 0x302   : > { %v2749_v41 = vpop.f32.mrf.mxu0  ;;  %v2762_v42 = vpop.f32.mrf.mxu1  ;;  %v2711_v46 = vadd.f32 %v2710_v32, %v2698_v57 }
 0x303   : > { %v2673_v43 = vpop.f32.mrf.mxu2  ;;  %v2686_v44 = vpop.f32.mrf.mxu3 }
 0x30a   : > { %v2751_v48 = vpop.f32.mrf.mxu0  ;;  %v2764_v49 = vpop.f32.mrf.mxu1 }
 0x30c   : > { %v2723_v51 = vpop.f32.mrf.mxu2  ;;  %v2736_v52 = vpop.f32.mrf.mxu3 }
 0x30d   : > { %v2724_v60 = vadd.f32 %v2723_v51, %v2711_v46 }
 0x30f   : > { %v2737_v63 = vadd.f32 %v2736_v52, %v2724_v60 }
 0x311   : > { %v2750_v1 = vadd.f32 %v2749_v41, %v2737_v63 }
 0x313   : > { %v2763_v3 = vadd.f32 %v2762_v42, %v2750_v1 }
 0x314   : > { %v2725_v55 = vpop.f32.mrf.mxu2  ;;  %v2738_v56 = vpop.f32.mrf.mxu3 }
 0x320   : > { %v2801_v61 = vpop.f32.mrf.mxu0  ;;  %v2814_v62 = vpop.f32.mrf.mxu1 }
 0x328   : > { %v2803_v58 = vpop.f32.mrf.mxu0  ;;  %v2816_v59 = vpop.f32.mrf.mxu1 }
 0x32c   : > { %v2775_v4 = vpop.f32.mrf.mxu2  ;;  %v2788_v5 = vpop.f32.mrf.mxu3 }
 0x32d   : > { %v2776_v6 = vadd.f32 %v2775_v4, %v2763_v3 }
 0x32f   : > { %v2789_v8 = vadd.f32 %v2788_v5, %v2776_v6 }
 0x331   : > { %v2802_v9 = vadd.f32 %v2801_v61, %v2789_v8 }
 0x333   : > { %v2815_v10 = vadd.f32 %v2814_v62, %v2802_v9 }
 0x334   : > { %v2777_v11 = vpop.f32.mrf.mxu2  ;;  %v2790_v12 = vpop.f32.mrf.mxu3 }
 0x335   : > { %v2821_v13 = vsel %vm2820_vm4, %v2815_v10, -1e+30 }
 0x336   : > { %v2823_v14 = vsel %vm2822_vm5, %v2821_v13, -inf }
 0x337   : > { %2824 = vmax.xlane.f32.xlu1 %v2823_v14 }
 0x3aa   : > { %v2825_v15 = vpop.xlane.xlu1 %2824 }
 0x3ab   : > { %v2826_v16 = vsub.f32 %v2821_v13, %v2825_v15 }
 0x3ad   : > { %v2827_v0 = vmul.f32 1.442695, %v2826_v16 }
 0x3af   : > { %4374 = vpow2.f32 %v2827_v0 }
 0x3b5   : > { %v4375_v17 = vpop.eup %4374 }
 0x3b6   : > { %v2829_v18 = vsel %vm2822_vm5, %v4375_v17, 0.0 }
 0x3b7   : > { %2830 = vadd.xlane.f32.xlu1 %v2829_v18 }
 0x42a   : > { %v2831_v19 = vpop.xlane.xlu1 %2830 }
 0x42b   : > { %4376 = vlog2.f32 %v2831_v19 }
 0x431   : > { %v4377_v20 = vpop.eup %4376 }
 0x432   : > { %v2833_v21 = vmul.f32 0.6931472, %v4377_v20 }
 0x434   : > { %v2834_v22 = vsub.f32 %v2826_v16, %v2833_v21 }
 0x436   : > { %2835 = vst [vmem:[%s324_s26] sm:$0x1] %v2834_v22 }
 0x437   : > { %4405 = shalt.err (!%p4402_p3)
}
 0x438   : > { %4331 = dma.vmem_to_hbm [thread:$0]  (%p4532_p5), %s2848_s27, 16, %s2850_s28, %s2837_s29  }
 0x439 PF: > { %p4337_p4 = scmp.ge.s32.totalorder %s4440_s12, 2  ;;  %s2861_s22 = sand.u32 1, %s4428_s30  }
 0x43a   : > { %s2862_s25 = scalar_lea.sflag [#allocation3], %s2861_s22 }
 0x43b   : > { %p4334_p7 = pnand %p4337_p4, %p4536_p6 }
 0x43d   : > { %p4335_p8 = pneg %p4334_p7 }
 0x43f   : > { %4423 = dma.done.wait (%p4335_p8), %s2862_s25, 16  }
 0x440   : > { %4425 = vsyncadd (%p4335_p8), %s2862_s25, 4294967280  ;;  %p19_p9 = scmp.ge.s32.totalorder %s4519_s15, 4   ;;  %s5887_s30 = smov %s4432_s10 }
 0x441   : > { %s5888_s10 = smov %s4436_s11  ;;  %s5889_s11 = smov %s4530_s18 }
 0x442   : > { %s5890_s12 = smov %s4519_s15  ;;  %21 = sbr.rel (!%p19_p9) target bundleno = 3 (0x3), region = 91 }
 0x447   :  { %2867 = vsyncpa [#allocation3], 1 }
 0x448   :  { %2869 = vsyncpa [#allocation3 + $0x1], 1 }

</bundles_post_ra>
